<compile_context>
chip_gen: v6e
topology: v6e:2x2x1
jax: 0.10.0
libtpu: 0.0.40
codegen_flags: <defaults>
</compile_context>

<pallas_src>
import jax
import jax.numpy as jnp
from jax.experimental import pallas as pl
from jax.experimental.pallas import tpu as pltpu


def _round_up(x, m):
    return ((x + m - 1) // m) * m


def _leaky_relu(x, slope=0.2):
    return jnp.where(x > 0, x, slope * x)


def _num_tensorcores():
    """Best-effort TensorCore-per-device count (megacore detection); defaults to 1."""
    try:
        n = getattr(jax.devices()[0], "num_cores", None)
        return int(n) if n else 1
    except Exception:
        return 1


def disc_kernel(x_ref, w1_ref, b1_ref, w2_ref, b2_ref, w3_ref, b3_ref, o_ref):
    # f32 -> bf16 cast on the VPU (hidden under MXU work) instead of a wrapper-side pass.
    x = x_ref[...].astype(jnp.bfloat16)

    # Linear(D, 512) + LeakyReLU(0.2)  -- bf16 MXU, f32 accumulate.
    h1 = jnp.dot(x, w1_ref[...], preferred_element_type=jnp.float32) + b1_ref[...]
    h1 = _leaky_relu(h1)

    # Linear(512, 256) + LeakyReLU(0.2)
    h2 = jnp.dot(h1.astype(jnp.bfloat16), w2_ref[...],
                 preferred_element_type=jnp.float32) + b2_ref[...]
    h2 = _leaky_relu(h2)

    # Linear(256, 1): N=1 -> VPU multiply + XLU lane reduction instead of an MXU matmul.
    h3 = jnp.sum(h2 * w3_ref[...], axis=-1, keepdims=True) + b3_ref[...]

    # Sigmoid: exp on the EUP, divide as an approx reciprocal (also EUP slot).
    o_ref[...] = pl.reciprocal(1.0 + jnp.exp(-h3), approx=True)


def discriminator_forward(img, params, *, tile_b=512):
    """img: (B, C, H, W) float32. Returns validity (B, 1) float32."""
    w1, b1, w2, b2, w3, b3 = params
    B = img.shape[0]
    D = w1.shape[0]
    H1 = w1.shape[1]   # 512
    H2 = w2.shape[1]   # 256

    # Flatten like img.view(B, -1); keep f32 -- the bf16 cast happens inside the kernel.
    x = img.reshape(B, D)
    if x.dtype != jnp.float32:
        x = x.astype(jnp.float32)
    w1b = w1.astype(jnp.bfloat16)
    w2b = w2.astype(jnp.bfloat16)
    w3_row = w3.reshape(1, H2).astype(jnp.float32)   # (256,1) -> (1,256) row for the VPU

    # Batch tile: multiple of 16, at most tile_b.  Only on multi-TensorCore chips do we
    # shrink it to guarantee at least one grid step per core; on single-TC v5e/v6e one
    # big tile minimizes per-step overhead.  Ragged last tile handled by Pallas (no pad).
    tb = min(tile_b, _round_up(B, 16))
    num_tc = _num_tensorcores()
    if num_tc > 1:
        tb = min(tb, max(16, _round_up(pl.cdiv(B, num_tc), 16)))
    grid = (pl.cdiv(B, tb),)

    # Tight VMEM request: double-buffered inputs/output + f32/bf16 intermediates + a few
    # MiB headroom.  (~18 MiB at tb=512, D=1024 -- well inside every generation's VMEM.)
    io_bytes = (tb * D * 4                 # x tile (f32)
                + D * H1 * 2 + H1 * 4      # w1 (bf16), b1
                + H1 * H2 * 2 + H2 * 4     # w2 (bf16), b2
                + H2 * 4 + 4               # w3 row, b3
                + tb * 4)                  # out tile
    interm_bytes = tb * (D * 2 + H1 * (4 + 2) + H2 * 4)   # x bf16, h1 f32+bf16, h2 f32
    vmem_limit = int(2 * io_bytes + interm_bytes + (8 << 20))

    out = pl.pallas_call(
        disc_kernel,
        out_shape=jax.ShapeDtypeStruct((B, 1), jnp.float32),
        grid_spec=pltpu.PrefetchScalarGridSpec(
            num_scalar_prefetch=0,
            grid=grid,
            in_specs=[
                pl.BlockSpec((tb, D), lambda i: (i, 0)),    # x tile (f32)
                pl.BlockSpec((D, H1), lambda i: (0, 0)),    # w1 (bf16), VMEM-resident
                pl.BlockSpec((1, H1), lambda i: (0, 0)),    # b1
                pl.BlockSpec((H1, H2), lambda i: (0, 0)),   # w2 (bf16), VMEM-resident
                pl.BlockSpec((1, H2), lambda i: (0, 0)),    # b2
                pl.BlockSpec((1, H2), lambda i: (0, 0)),    # w3 as a row
                pl.BlockSpec((1, 1), lambda i: (0, 0)),     # b3
            ],
            out_specs=pl.BlockSpec((tb, 1), lambda i: (i, 0)),
        ),
        compiler_params=pltpu.CompilerParams(
            dimension_semantics=("parallel",),
            vmem_limit_bytes=vmem_limit,
        ),
    )(x, w1b, b1, w2b, b2, w3_row, b3)

    return out


def init_params(key, img_shape):
    """Deterministic init matching PyTorch Linear default (uniform +-1/sqrt(fan_in))."""
    D = int(img_shape[0] * img_shape[1] * img_shape[2])
    dims = [(D, 512), (512, 256), (256, 1)]
    params = []
    keys = jax.random.split(key, 2 * len(dims))
    for li, (fin, fout) in enumerate(dims):
        bound = 1.0 / (fin ** 0.5)
        w = jax.random.uniform(keys[2 * li], (fin, fout), jnp.float32, -bound, bound)
        b = jax.random.uniform(keys[2 * li + 1], (1, fout), jnp.float32, -bound, bound)
        params += [w, b]
    return tuple(params)


def reference_forward(img, params):
    """Pure-JAX f32 reference of the PyTorch module."""
    w1, b1, w2, b2, w3, b3 = params
    x = img.reshape(img.shape[0], -1)
    h1 = jax.nn.leaky_relu(x @ w1 + b1, 0.2)
    h2 = jax.nn.leaky_relu(h1 @ w2 + b2, 0.2)
    return jax.nn.sigmoid(h2 @ w3 + b3)


if __name__ == "__main__":
    img_shape = (4, 16, 16)   # (C, H, W) -> D = 1024
    B = 2

    key = jax.random.PRNGKey(0)
    k_img, k_par = jax.random.split(key)
    img = jax.random.normal(k_img, (B,) + img_shape, dtype=jnp.float32)
    params = init_params(k_par, img_shape)

    out = jax.block_until_ready(discriminator_forward(img, params))
    ref = reference_forward(img, params)
    assert out.shape == (B, 1)
    assert jnp.allclose(out, ref, atol=2e-2, rtol=2e-2), "mismatch vs reference (small B)"

    # Second check: batch that is not a multiple of the tile -> exercises the ragged
    # (partial) last block on both the x input and the output.
    B2 = 300
    img2 = jax.random.normal(jax.random.PRNGKey(1), (B2,) + img_shape, dtype=jnp.float32)
    out2 = jax.block_until_ready(discriminator_forward(img2, params))
    ref2 = reference_forward(img2, params)
    assert out2.shape == (B2, 1)
    assert jnp.allclose(out2, ref2, atol=2e-2, rtol=2e-2), "mismatch vs reference (large B)"

    print("KERNEL_OK")
</pallas_src>

<mosaic_0001>
module attributes {stable_mosaic.version = 11 : i64} {
  func.func @disc_kernel(%arg0: i32, %arg1: memref<16x1024xf32, #tpu.memory_space<vmem>>, %arg2: memref<1024x512xbf16, #tpu.memory_space<vmem>>, %arg3: memref<1x512xf32, #tpu.memory_space<vmem>>, %arg4: memref<512x256xbf16, #tpu.memory_space<vmem>>, %arg5: memref<1x256xf32, #tpu.memory_space<vmem>>, %arg6: memref<1x256xf32, #tpu.memory_space<vmem>>, %arg7: memref<1x1xf32, #tpu.memory_space<vmem>>, %arg8: memref<16x1xf32, #tpu.memory_space<vmem>>) attributes {dimension_semantics = [#tpu.dimension_semantics<parallel>], iteration_bounds = array<i64: 1>, scalar_prefetch = 0 : i64, scratch_operands = 0 : i64, tpu.core_type = #tpu.core_type<tc>, window_params = [{transform_indices = @transform_0, window_bounds = array<i64: 16, 1024>}, {pipeline_mode = #tpu.pipeline_mode<synchronous>, transform_indices = @transform_1, window_bounds = array<i64: 1024, 512>}, {pipeline_mode = #tpu.pipeline_mode<synchronous>, transform_indices = @transform_2, window_bounds = array<i64: 1, 512>}, {pipeline_mode = #tpu.pipeline_mode<synchronous>, transform_indices = @transform_3, window_bounds = array<i64: 512, 256>}, {pipeline_mode = #tpu.pipeline_mode<synchronous>, transform_indices = @transform_4, window_bounds = array<i64: 1, 256>}, {pipeline_mode = #tpu.pipeline_mode<synchronous>, transform_indices = @transform_5, window_bounds = array<i64: 1, 256>}, {pipeline_mode = #tpu.pipeline_mode<synchronous>, transform_indices = @transform_6, window_bounds = array<i64: 1, 1>}, {transform_indices = @transform_7, window_bounds = array<i64: 16, 1>}]} {
    %c0 = arith.constant 0 : index
    %c0_0 = arith.constant 0 : index
    %0 = vector.load %arg1[%c0, %c0_0] : memref<16x1024xf32, #tpu.memory_space<vmem>>, vector<16x1024xf32>
    %1 = arith.truncf %0 : vector<16x1024xf32> to vector<16x1024xbf16>
    %c0_1 = arith.constant 0 : index
    %c0_2 = arith.constant 0 : index
    %2 = vector.load %arg2[%c0_1, %c0_2] : memref<1024x512xbf16, #tpu.memory_space<vmem>>, vector<1024x512xbf16>
    %cst = arith.constant dense<0.000000e+00> : vector<16x512xf32>
    %3 = tpu.matmul %1, %2, %cst {dimension_numbers = #tpu.dot_dimension_numbers<[1], [0], [0], [1], [0, 0, 1, 1], [], []>} : vector<16x1024xbf16>, vector<1024x512xbf16>, vector<16x512xf32> -> vector<16x512xf32>
    %c0_3 = arith.constant 0 : index
    %c0_4 = arith.constant 0 : index
    %4 = vector.load %arg3[%c0_3, %c0_4] : memref<1x512xf32, #tpu.memory_space<vmem>>, vector<1x512xf32>
    %5 = vector.broadcast %4 : vector<1x512xf32> to vector<16x512xf32>
    %6 = arith.addf %3, %5 : vector<16x512xf32>
    %cst_5 = arith.constant 0.000000e+00 : f32
    %7 = vector.broadcast %cst_5 : f32 to vector<16x512xf32>
    %8 = arith.cmpf ogt, %6, %7 : vector<16x512xf32>
    %cst_6 = arith.constant 2.000000e-01 : f32
    %9 = vector.broadcast %cst_6 : f32 to vector<16x512xf32>
    %10 = arith.mulf %9, %6 : vector<16x512xf32>
    %11 = arith.select %8, %6, %10 : vector<16x512xi1>, vector<16x512xf32>
    %12 = arith.truncf %11 : vector<16x512xf32> to vector<16x512xbf16>
    %c0_7 = arith.constant 0 : index
    %c0_8 = arith.constant 0 : index
    %13 = vector.load %arg4[%c0_7, %c0_8] : memref<512x256xbf16, #tpu.memory_space<vmem>>, vector<512x256xbf16>
    %cst_9 = arith.constant dense<0.000000e+00> : vector<16x256xf32>
    %14 = tpu.matmul %12, %13, %cst_9 {dimension_numbers = #tpu.dot_dimension_numbers<[1], [0], [0], [1], [0, 0, 1, 1], [], []>} : vector<16x512xbf16>, vector<512x256xbf16>, vector<16x256xf32> -> vector<16x256xf32>
    %c0_10 = arith.constant 0 : index
    %c0_11 = arith.constant 0 : index
    %15 = vector.load %arg5[%c0_10, %c0_11] : memref<1x256xf32, #tpu.memory_space<vmem>>, vector<1x256xf32>
    %16 = vector.broadcast %15 : vector<1x256xf32> to vector<16x256xf32>
    %17 = arith.addf %14, %16 : vector<16x256xf32>
    %cst_12 = arith.constant 0.000000e+00 : f32
    %18 = vector.broadcast %cst_12 : f32 to vector<16x256xf32>
    %19 = arith.cmpf ogt, %17, %18 : vector<16x256xf32>
    %cst_13 = arith.constant 2.000000e-01 : f32
    %20 = vector.broadcast %cst_13 : f32 to vector<16x256xf32>
    %21 = arith.mulf %20, %17 : vector<16x256xf32>
    %22 = arith.select %19, %17, %21 : vector<16x256xi1>, vector<16x256xf32>
    %c0_14 = arith.constant 0 : index
    %c0_15 = arith.constant 0 : index
    %23 = vector.load %arg6[%c0_14, %c0_15] : memref<1x256xf32, #tpu.memory_space<vmem>>, vector<1x256xf32>
    %24 = vector.broadcast %23 : vector<1x256xf32> to vector<16x256xf32>
    %25 = arith.mulf %22, %24 : vector<16x256xf32>
    %cst_16 = arith.constant dense<0.000000e+00> : vector<16xf32>
    %26 = vector.multi_reduction <add>, %25, %cst_16 [1] : vector<16x256xf32> to vector<16xf32>
    %27 = vector.shape_cast %26 : vector<16xf32> to vector<16x1xf32>
    %c0_17 = arith.constant 0 : index
    %c0_18 = arith.constant 0 : index
    %28 = vector.load %arg7[%c0_17, %c0_18] : memref<1x1xf32, #tpu.memory_space<vmem>>, vector<1x1xf32>
    %29 = vector.broadcast %28 : vector<1x1xf32> to vector<16x1xf32>
    %30 = arith.addf %27, %29 : vector<16x1xf32>
    %cst_19 = arith.constant 0.000000e+00 : f32
    %31 = vector.broadcast %cst_19 : f32 to vector<16x1xf32>
    %32 = arith.subf %31, %30 : vector<16x1xf32>
    %33 = math.exp %32 : vector<16x1xf32>
    %cst_20 = arith.constant 1.000000e+00 : f32
    %34 = vector.broadcast %cst_20 : f32 to vector<16x1xf32>
    %35 = arith.addf %34, %33 : vector<16x1xf32>
    %36 = tpu.reciprocal %35 {approx = true} : vector<16x1xf32> -> vector<16x1xf32>
    %c0_21 = arith.constant 0 : index
    %c0_22 = arith.constant 0 : index
    %37 = vector.load %arg8[%c0_21, %c0_22] : memref<16x1xf32, #tpu.memory_space<vmem>>, vector<16x1xf32>
    tpu.vector_store %arg8[%c0_21, %c0_22], %36 {strides = array<i32>} : memref<16x1xf32, #tpu.memory_space<vmem>>, vector<16x1xf32>,
    return
  }
  func.func @transform_0(%arg0: i32) -> (i32, i32) {
    %c0_i32 = arith.constant 0 : i32
    %c0_i32_0 = arith.constant 0 : i32
    return %arg0, %c0_i32 : i32, i32
  }
  func.func @transform_1(%arg0: i32) -> (i32, i32) {
    %c0_i32 = arith.constant 0 : i32
    %c0_i32_0 = arith.constant 0 : i32
    %c0_i32_1 = arith.constant 0 : i32
    return %c0_i32, %c0_i32_0 : i32, i32
  }
  func.func @transform_2(%arg0: i32) -> (i32, i32) {
    %c0_i32 = arith.constant 0 : i32
    %c0_i32_0 = arith.constant 0 : i32
    %c0_i32_1 = arith.constant 0 : i32
    return %c0_i32, %c0_i32_0 : i32, i32
  }
  func.func @transform_3(%arg0: i32) -> (i32, i32) {
    %c0_i32 = arith.constant 0 : i32
    %c0_i32_0 = arith.constant 0 : i32
    %c0_i32_1 = arith.constant 0 : i32
    return %c0_i32, %c0_i32_0 : i32, i32
  }
  func.func @transform_4(%arg0: i32) -> (i32, i32) {
    %c0_i32 = arith.constant 0 : i32
    %c0_i32_0 = arith.constant 0 : i32
    %c0_i32_1 = arith.constant 0 : i32
    return %c0_i32, %c0_i32_0 : i32, i32
  }
  func.func @transform_5(%arg0: i32) -> (i32, i32) {
    %c0_i32 = arith.constant 0 : i32
    %c0_i32_0 = arith.constant 0 : i32
    %c0_i32_1 = arith.constant 0 : i32
    return %c0_i32, %c0_i32_0 : i32, i32
  }
  func.func @transform_6(%arg0: i32) -> (i32, i32) {
    %c0_i32 = arith.constant 0 : i32
    %c0_i32_0 = arith.constant 0 : i32
    %c0_i32_1 = arith.constant 0 : i32
    return %c0_i32, %c0_i32_0 : i32, i32
  }
  func.func @transform_7(%arg0: i32) -> (i32, i32) {
    %c0_i32 = arith.constant 0 : i32
    %c0_i32_0 = arith.constant 0 : i32
    return %arg0, %c0_i32 : i32, i32
  }
}

</mosaic_0001>

<bundles_post_ra>
// kernel: tpu_custom_call.1
= control target key start
LH: loop header
LB: loop body
LE: loop exit
PB: predicated region body
PF: predicated region fallthrough
CT: control target
= control target key end

     0   :  { %s3862_s0 = inlined_call_operand.hbm [shape: f32[2,1024], index: 0, kind: input, shape index: {}]   ;;  %s3863_s1 = inlined_call_operand.hbm [shape: bf16[1024,512], index: 1, kind: input, shape index: {}]   ;;  %s3864_s2 = inlined_call_operand.vmem [shape: f32[1,512], index: 2, kind: input, shape index: {}]   ;;  %s3865_s3 = inlined_call_operand.hbm [shape: bf16[512,256], index: 3, kind: input, shape index: {}]   ;;  %s3866_s4 = inlined_call_operand.vmem [shape: f32[1,256], index: 4, kind: input, shape index: {}]   ;;  %s3867_s5 = inlined_call_operand.vmem [shape: f32[1,256], index: 5, kind: input, shape index: {}]   ;;  %s3868_s6 = inlined_call_operand.<no memory space> [shape: f32[1,1], index: 6, kind: input, shape index: {}]   ;;  %s3869_s7 = inlined_call_operand.vmem [shape: f32[2,1], index: 7, kind: output, shape index: {}]  }
   0x1   :  { %v12_v0 = vstv %s3868_s6 }
   0x2   :  { %13 = vst [vmem:[#allocation2] sm:$0x1] %v12_v0 }
   0x3   :  { %14 = vsyncpa [#allocation4], 0 }
   0x4   :  { %15 = vsyncpa [#allocation6], 0 }
   0x5   :  { %20 = vsyncadd [#allocation4], 1792  ;;  %s3685_s26 = smov [#allocation5]   ;;  %s3686_s28 = smov [#allocation3]  }
   0x6   :  { %s33_s27 = sshll.u32 %s3685_s26, 4  ;;  %s21_s29 = sshll.u32 %s3686_s28, 4  ;;  %s34_s27 = int_to_ptr.vmem [resolvable:$true] %s33_s27  ;;  %s22_s29 = int_to_ptr.vmem [resolvable:$true] %s21_s29 }
   0x7   :  { %s3629_s30 = scalar_lea.vmem %s34_s27, 32768  ;;  %p3634_p1 = scmp.lt.s32.totalorder %s34_s27, %s34_s27 }
   0x8   :  { %p3630_p0 = scmp.ne.s32.totalorder %s34_s27, %s3629_s30  ;;  %p3635_p2 = scmp.lt.s32.totalorder %s3629_s30, %s3629_s30 }
   0xa   :  { %p3636_p3 = por %p3635_p2, %p3634_p1 }
   0xc   :  { %p3637_p4 = pnand %p3636_p3, %p3630_p0 }
   0xe   :  { %3640 = shalt.err (!%p3637_p4)
}
   0xf   :  { %s3687_s8 = smov 256   ;;  %s3688_s9 = smov 16  }
  0x10   :  { %39 = dma.hbm_to_vmem [thread:$0]  %s3863_s1, 32768, %s34_s27, [#allocation6], %s3687_s8, %s3687_s8, %s3688_s9  }
  0x11   :  { %s3649_s11 = scalar_lea.vmem %s22_s29, 256  ;;  %s3653_s12 = scalar_lea.vmem %s22_s29, 2048 }
  0x12   :  { %p3650_p5 = scmp.ne.s32.totalorder %s22_s29, %s3649_s11  ;;  %p3654_p6 = scmp.lt.s32.totalorder %s22_s29, %s22_s29 }
  0x13   :  { %p3655_p7 = scmp.lt.s32.totalorder %s3653_s12, %s3649_s11 }
  0x15   :  { %p3656_p8 = por %p3655_p7, %p3654_p6 }
  0x17   :  { %p3657_p9 = pnand %p3656_p8, %p3650_p5 }
  0x19   :  { %3660 = shalt.err (!%p3657_p9)
}
  0x1a   :  { %27 = dma.hbm_to_vmem [thread:$0]  %s3862_s0, 256, %s22_s29, [#allocation4], %s3687_s8, %s3687_s8, %s3688_s9  }
  0x1b   :  { %s3689_s15 = smov [#allocation7]  }
  0x1c   :  { %s47_s16 = sshll.u32 %s3689_s15, 4  ;;  %s48_s16 = int_to_ptr.vmem [resolvable:$true] %s47_s16 }
  0x1d   :  { %s3669_s17 = scalar_lea.vmem %s48_s16, 8192  ;;  %p3674_p11 = scmp.lt.s32.totalorder %s48_s16, %s48_s16 }
  0x1e   :  { %p3670_p10 = scmp.ne.s32.totalorder %s48_s16, %s3669_s17  ;;  %p3675_p12 = scmp.lt.s32.totalorder %s3669_s17, %s3669_s17 }
  0x20   :  { %p3676_p13 = por %p3675_p12, %p3674_p11 }
  0x22   :  { %p3677_p0 = pnand %p3676_p13, %p3670_p10 }
  0x24   :  { %3680 = shalt.err (!%p3677_p0)
}
  0x25   :  { %s3690_s1 = smov 128   ;;  %s3691_s18 = smov 8  }
  0x26   :  { %53 = dma.hbm_to_vmem [thread:$0]  %s3865_s3, 8192, %s48_s16, [#allocation6], %s3690_s1, %s3690_s1, %s3691_s18  }
  0x27   :  { %3681 = dma.done.wait [#allocation4], 2048  }
  0x28   :  { %3682 = vsyncadd [#allocation4], 4294965248 }
  0x29   :  { %3683 = dma.done.wait [#allocation6], 40960  }
  0x2a   :  { %3684 = vsyncadd [#allocation6], 4294926336  ;;  %v3109_v1 = vld [vmem:[#allocation5 + $0xe4] ss:$16 sps:$4 sm:$0xff]   ;;  %v3113_v3 = vld [vmem:[#allocation5 + $0xe0] ss:$16 sps:$4 sm:$0xff]   ;;  %v108_v42 = vlaneseq }
  0x2b   :  { %v3111_v2 = vld [vmem:[#allocation5 + $0x2e4] ss:$16 sps:$4 sm:$0xff]   ;;  %1827 = vmatprep.subr.bf16.mxu0 %v3109_v1  ;;  %v3114_v4 = vld [vmem:[#allocation5 + $0x2e0] ss:$16 sps:$4 sm:$0xff]   ;;  %v3692_v40 = vmov 1983009808  }
  0x2c   :  { %1870 = vmatprep.subr.bf16.mxu1 %v3111_v2  ;;  %v3115_v5 = vld [vmem:[#allocation5 + $0xc4] ss:$16 sps:$4 sm:$0xff]   ;;  %1828 = vmatpush1.bf16.msra.mxu0 %v3113_v3  ;;  %v3119_v7 = vld [vmem:[#allocation5 + $0xc0] ss:$16 sps:$4 sm:$0xff]   ;;  %v106_v41 = vunpack.c.l.s4 %v3692_v40  ;;  %v3745_v49 = vshrl.u32 %v108_v42, 7  ;;  %vm2734_vm12 = vcmask 7168  }
  0x2d   :  { %1871 = vmatpush1.bf16.msra.mxu1 %v3114_v4  ;;  %v3117_v6 = vld [vmem:[#allocation5 + $0x2c4] ss:$16 sps:$4 sm:$0xff]   ;;  %1829 = vmatprep.subr.bf16.mxu0 %v3115_v5  ;;  %v3120_v8 = vld [vmem:[#allocation5 + $0x2c0] ss:$16 sps:$4 sm:$0xff]  }
  0x2e   :  { %1872 = vmatprep.subr.bf16.mxu1 %v3117_v6  ;;  %v3121_v9 = vld [vmem:[#allocation5 + $0xa4] ss:$16 sps:$4 sm:$0xff]   ;;  %v3125_v11 = vld [vmem:[#allocation5 + $0xa0] ss:$16 sps:$4 sm:$0xff]   ;;  %v107_v48 = vunpack.c.0.s8 %v106_v41 }
  0x2f   :  { %v3123_v10 = vld [vmem:[#allocation5 + $0x2a4] ss:$16 sps:$4 sm:$0xff]   ;;  %v3126_v12 = vld [vmem:[#allocation5 + $0x2a0] ss:$16 sps:$4 sm:$0xff]  }
  0x30   :  { %1830 = vmatpush1.bf16.msra.mxu0 %v3119_v7  ;;  %v3127_v13 = vld [vmem:[#allocation5 + $0x84] ss:$16 sps:$4 sm:$0xff]   ;;  %v3131_v15 = vld [vmem:[#allocation5 + $0x80] ss:$16 sps:$4 sm:$0xff]   ;;  %v3748_v56 = vsub.s32 %v107_v48, %v3745_v49 }
  0x31   :  { %1873 = vmatpush1.bf16.msra.mxu1 %v3120_v8  ;;  %1831 = vmatprep.subr.bf16.mxu0 %v3121_v9  ;;  %v3129_v14 = vld [vmem:[#allocation5 + $0x284] ss:$16 sps:$4 sm:$0xff]   ;;  %v3132_v16 = vld [vmem:[#allocation5 + $0x280] ss:$16 sps:$4 sm:$0xff]  }
  0x32   :  { %1874 = vmatprep.subr.bf16.mxu1 %v3123_v10  ;;  %v3133_v17 = vld [vmem:[#allocation5 + $0x64] ss:$16 sps:$4 sm:$0xff]   ;;  %v3137_v19 = vld [vmem:[#allocation5 + $0x60] ss:$16 sps:$4 sm:$0xff]  }
  0x33   :  { %v3135_v18 = vld [vmem:[#allocation5 + $0x264] ss:$16 sps:$4 sm:$0xff]   ;;  %v3138_v20 = vld [vmem:[#allocation5 + $0x260] ss:$16 sps:$4 sm:$0xff]  }
  0x34   :  { %1832 = vmatpush1.bf16.msra.mxu0 %v3125_v11  ;;  %v3139_v21 = vld [vmem:[#allocation5 + $0x44] ss:$16 sps:$4 sm:$0xff]   ;;  %v3143_v23 = vld [vmem:[#allocation5 + $0x40] ss:$16 sps:$4 sm:$0xff]  }
  0x35   :  { %1875 = vmatpush1.bf16.msra.mxu1 %v3126_v12  ;;  %1833 = vmatprep.subr.bf16.mxu0 %v3127_v13  ;;  %v3141_v22 = vld [vmem:[#allocation5 + $0x244] ss:$16 sps:$4 sm:$0xff]   ;;  %v3144_v24 = vld [vmem:[#allocation5 + $0x240] ss:$16 sps:$4 sm:$0xff]  }
  0x36   :  { %1876 = vmatprep.subr.bf16.mxu1 %v3129_v14  ;;  %v3145_v25 = vld [vmem:[#allocation5 + $0x24] ss:$16 sps:$4 sm:$0xff]   ;;  %v3149_v27 = vld [vmem:[#allocation5 + $0x20] ss:$16 sps:$4 sm:$0xff]  }
  0x37   :  { %v3147_v26 = vld [vmem:[#allocation5 + $0x224] ss:$16 sps:$4 sm:$0xff]   ;;  %v3150_v28 = vld [vmem:[#allocation5 + $0x220] ss:$16 sps:$4 sm:$0xff]  }
  0x38   :  { %1834 = vmatpush1.bf16.msra.mxu0 %v3131_v15  ;;  %v3151_v29 = vld [vmem:[#allocation5 + $0x4] ss:$16 sps:$4 sm:$0xff]   ;;  %v3155_v31 = vld [vmem:[#allocation5] ss:$16 sps:$4 sm:$0xff]  }
  0x39   :  { %1877 = vmatpush1.bf16.msra.mxu1 %v3132_v16  ;;  %1835 = vmatprep.subr.bf16.mxu0 %v3133_v17  ;;  %v3153_v30 = vld [vmem:[#allocation5 + $0x204] ss:$16 sps:$4 sm:$0xff]   ;;  %v3156_v32 = vld [vmem:[#allocation5 + $0x200] ss:$16 sps:$4 sm:$0xff]  }
  0x3a   :  { %1878 = vmatprep.subr.bf16.mxu1 %v3135_v18  ;;  %v3157_v33 = vld [vmem:[#allocation5 + $0x1e4] ss:$16 sps:$4 sm:$0xff]   ;;  %v3161_v35 = vld [vmem:[#allocation5 + $0x1e0] ss:$16 sps:$4 sm:$0xff]  }
  0x3b   :  { %v3159_v34 = vld [vmem:[#allocation5 + $0x3e4] ss:$16 sps:$4 sm:$0xff]   ;;  %v3162_v36 = vld [vmem:[#allocation5 + $0x3e0] ss:$16 sps:$4 sm:$0xff]  }
  0x3c   :  { %1836 = vmatpush1.bf16.msra.mxu0 %v3137_v19  ;;  %v3163_v37 = vld [vmem:[#allocation5 + $0x1c4] ss:$16 sps:$4 sm:$0xff]   ;;  %v3167_v39 = vld [vmem:[#allocation5 + $0x1c0] ss:$16 sps:$4 sm:$0xff]  }
  0x3d   :  { %1879 = vmatpush1.bf16.msra.mxu1 %v3138_v20  ;;  %1837 = vmatprep.subr.bf16.mxu0 %v3139_v21  ;;  %v3165_v38 = vld [vmem:[#allocation5 + $0x3c4] ss:$16 sps:$4 sm:$0xff]   ;;  %v3168_v43 = vld [vmem:[#allocation5 + $0x3c0] ss:$16 sps:$4 sm:$0xff]  }
  0x3e   :  { %1880 = vmatprep.subr.bf16.mxu1 %v3141_v22  ;;  %v3169_v44 = vld [vmem:[#allocation5 + $0x1a4] ss:$16 sps:$4 sm:$0xff]   ;;  %v3173_v46 = vld [vmem:[#allocation5 + $0x1a0] ss:$16 sps:$4 sm:$0xff]  }
  0x3f   :  { %v3171_v45 = vld [vmem:[#allocation5 + $0x3a4] ss:$16 sps:$4 sm:$0xff]   ;;  %v3174_v47 = vld [vmem:[#allocation5 + $0x3a0] ss:$16 sps:$4 sm:$0xff]  }
  0x40   :  { %1838 = vmatpush1.bf16.msra.mxu0 %v3143_v23  ;;  %v3175_v50 = vld [vmem:[#allocation5 + $0x184] ss:$16 sps:$4 sm:$0xff]   ;;  %v3179_v52 = vld [vmem:[#allocation5 + $0x180] ss:$16 sps:$4 sm:$0xff]  }
  0x41   :  { %1881 = vmatpush1.bf16.msra.mxu1 %v3144_v24  ;;  %1839 = vmatprep.subr.bf16.mxu0 %v3145_v25  ;;  %v3177_v51 = vld [vmem:[#allocation5 + $0x384] ss:$16 sps:$4 sm:$0xff]   ;;  %v3180_v53 = vld [vmem:[#allocation5 + $0x380] ss:$16 sps:$4 sm:$0xff]  }
  0x42   :  { %1882 = vmatprep.subr.bf16.mxu1 %v3147_v26  ;;  %v3181_v54 = vld [vmem:[#allocation5 + $0x164] ss:$16 sps:$4 sm:$0xff]   ;;  %v3205_v57 = vld [vmem:[#allocation3] ss:$16 sps:$4 sm:$0xff]  }
  0x43   :  { %v3183_v55 = vld [vmem:[#allocation5 + $0x364] ss:$16 sps:$4 sm:$0xff]   ;;  %v3207_v58 = vld [vmem:[#allocation3 + $0x20] ss:$16 sps:$4 sm:$0xff]   ;;  %v111_v0 = vrot.slane %v3205_v57, %v3748_v56 }
  0x44   :  { %1840 = vmatpush1.bf16.msra.mxu0 %v3149_v27  ;;  %v3185_v59 = vld [vmem:[#allocation5 + $0x160] ss:$16 sps:$4 sm:$0xff]   ;;  %v3213_v63 = vld [vmem:[#allocation3 + $0x4] ss:$16 sps:$4 sm:$0xff]   ;;  %v125_v1 = vrot.slane %v3207_v58, %v3748_v56 }
  0x45   :  { %1883 = vmatpush1.bf16.msra.mxu1 %v3150_v28  ;;  %1841 = vmatprep.subr.bf16.mxu0 %v3151_v29  ;;  %v3186_v60 = vld [vmem:[#allocation5 + $0x360] ss:$16 sps:$4 sm:$0xff]   ;;  %v3214_v2 = vld [vmem:[#allocation3 + $0x24] ss:$16 sps:$4 sm:$0xff]   ;;  %v118_v8 = vrot.slane %v3213_v63, %v3748_v56 }
  0x46   :  { %1884 = vmatprep.subr.bf16.mxu1 %v3153_v30  ;;  %v3209_v61 = vld [vmem:[#allocation3 + $0x40] ss:$16 sps:$4 sm:$0xff]   ;;  %v3215_v3 = vld [vmem:[#allocation3 + $0x44] ss:$16 sps:$4 sm:$0xff]   ;;  %v134_v10 = vcombine.high %v111_v0, %v125_v1  ;;  %v132_v11 = vrot.slane %v3214_v2, %v3748_v56  ;;  %v133_v29 = vcombine.low %v111_v0, %v125_v1 }
  0x47   :  { %v3211_v62 = vld [vmem:[#allocation3 + $0x60] ss:$16 sps:$4 sm:$0xff]   ;;  %v3216_v4 = vld [vmem:[#allocation3 + $0x64] ss:$16 sps:$4 sm:$0xff]   ;;  %v183_v6 = vrot.slane %v3209_v61, %v3748_v56  ;;  %v190_v12 = vrot.slane %v3215_v3, %v3748_v56 }
  0x48   :  { %1842 = vmatpush1.bf16.msra.mxu0 %v3155_v31  ;;  %v3187_v5 = vld [vmem:[#allocation5 + $0x144] ss:$16 sps:$4 sm:$0xff]   ;;  %v197_v7 = vrot.slane %v3211_v62, %v3748_v56  ;;  %v204_v14 = vrot.slane %v3216_v4, %v3748_v56  ;;  %v3191_v15 = vld [vmem:[#allocation5 + $0x140] ss:$16 sps:$4 sm:$0xff]   ;;  %v136_v17 = vcombine.high %v118_v8, %v132_v11  ;;  %v135_v31 = vcombine.low %v118_v8, %v132_v11  ;;  %v3315_v8 = vld [vmem:[#allocation3 + $0x28] ss:$16 sps:$4 sm:$0xff]  }
  0x49   :  { %1885 = vmatpush1.bf16.msra.mxu1 %v3156_v32  ;;  %1843 = vmatprep.subr.bf16.mxu0 %v3157_v33  ;;  %v3189_v9 = vld [vmem:[#allocation5 + $0x344] ss:$16 sps:$4 sm:$0xff]   ;;  %v3192_v16 = vld [vmem:[#allocation5 + $0x340] ss:$16 sps:$4 sm:$0xff]   ;;  %v3317_v11 = vld [vmem:[#allocation3 + $0x48] ss:$16 sps:$4 sm:$0xff]  }
  0x4a   :  { %1886 = vmatprep.subr.bf16.mxu1 %v3159_v34  ;;  %v206_v13 = vcombine.high %v183_v6, %v197_v7  ;;  %v3193_v18 = vld [vmem:[#allocation5 + $0x124] ss:$16 sps:$4 sm:$0xff]   ;;  %v208_v20 = vcombine.high %v190_v12, %v204_v14  ;;  %v3197_v23 = vld [vmem:[#allocation5 + $0x120] ss:$16 sps:$4 sm:$0xff]   ;;  %v205_v30 = vcombine.low %v183_v6, %v197_v7  ;;  %v207_v32 = vcombine.low %v190_v12, %v204_v14  ;;  %v3313_v7 = vld [vmem:[#allocation3 + $0x8] ss:$16 sps:$4 sm:$0xff]  }
  0x4b   :  { %v3195_v21 = vld [vmem:[#allocation5 + $0x324] ss:$16 sps:$4 sm:$0xff]   ;;  %v3198_v24 = vld [vmem:[#allocation5 + $0x320] ss:$16 sps:$4 sm:$0xff]   ;;  %v3319_v12 = vld [vmem:[#allocation3 + $0x68] ss:$16 sps:$4 sm:$0xff]   ;;  %v3771_v14 = vrot.slane %v3313_v7, %v3748_v56 }
  0x4c   :  { %1844 = vmatpush2.bf16.msra.mxu0 %v3161_v35  ;;  %v3758_v19 = vpack.c.bf16 %v206_v13, %v134_v10  ;;  %v3761_v22 = vpack.c.bf16 %v208_v20, %v136_v17  ;;  %v3199_v25 = vld [vmem:[#allocation5 + $0x104] ss:$16 sps:$4 sm:$0xff]   ;;  %v3203_v27 = vld [vmem:[#allocation5 + $0x100] ss:$16 sps:$4 sm:$0xff]   ;;  %v3764_v35 = vpack.c.bf16 %v205_v30, %v133_v29  ;;  %v3321_v13 = vld [vmem:[#allocation3 + $0xc] ss:$16 sps:$4 sm:$0xff]  }
  0x4d   :  { %1887 = vmatpush2.bf16.msra.mxu1 %v3162_v36  ;;  %1845 = vmatprep.subr.bf16.mxu0 %v3163_v37  ;;  %v3201_v26 = vld [vmem:[#allocation5 + $0x304] ss:$16 sps:$4 sm:$0xff]   ;;  %v3204_v28 = vld [vmem:[#allocation5 + $0x300] ss:$16 sps:$4 sm:$0xff]   ;;  %v3766_v36 = vpack.c.bf16 %v207_v32, %v135_v31  ;;  %v3323_v17 = vld [vmem:[#allocation3 + $0x4c] ss:$16 sps:$4 sm:$0xff]  }
  0x4e   :  { %1888 = vmatprep.subr.bf16.mxu1 %v3165_v38  ;;  %1859 = vmatprep.mubr.bf16.mxu0 %v3758_v19  ;;  %v3219_v33 = vld [vmem:[#allocation5 + $0x4e4] ss:$16 sps:$4 sm:$0xff]   ;;  %v3217_v37 = vld [vmem:[#allocation5 + $0x4e0] ss:$16 sps:$4 sm:$0xff]  }
  0x4f   :  { %1902 = vmatprep.mubr.bf16.mxu1 %v3761_v22  ;;  %v3222_v34 = vld [vmem:[#allocation5 + $0x6e4] ss:$16 sps:$4 sm:$0xff]   ;;  %v3220_v38 = vld [vmem:[#allocation5 + $0x6e0] ss:$16 sps:$4 sm:$0xff]  }
  0x50   :  { %1846 = vmatpush2.bf16.msra.mxu0 %v3167_v39  ;;  %v3225_v39 = vld [vmem:[#allocation5 + $0x4c4] ss:$16 sps:$4 sm:$0xff]   ;;  %v3223_v41 = vld [vmem:[#allocation5 + $0x4c0] ss:$16 sps:$4 sm:$0xff]  }
  0x51   :  { %1889 = vmatpush2.bf16.msra.mxu1 %v3168_v43  ;;  %1847 = vmatprep.subr.bf16.mxu0 %v3169_v44  ;;  %v3228_v40 = vld [vmem:[#allocation5 + $0x6c4] ss:$16 sps:$4 sm:$0xff]   ;;  %v3226_v42 = vld [vmem:[#allocation5 + $0x6c0] ss:$16 sps:$4 sm:$0xff]  }
  0x52   :  { %1890 = vmatprep.subr.bf16.mxu1 %v3171_v45  ;;  %v3231_v43 = vld [vmem:[#allocation5 + $0x4a4] ss:$16 sps:$4 sm:$0xff]   ;;  %v3229_v45 = vld [vmem:[#allocation5 + $0x4a0] ss:$16 sps:$4 sm:$0xff]  }
  0x53   :  { %v3234_v44 = vld [vmem:[#allocation5 + $0x6a4] ss:$16 sps:$4 sm:$0xff]   ;;  %v3253_v63 = vld [vmem:[#allocation5 + $0x420] ss:$16 sps:$4 sm:$0xff]  }
  0x54   :  { %1848 = vmatpush2.bf16.msra.mxu0 %v3173_v46  ;;  %v3232_v46 = vld [vmem:[#allocation5 + $0x6a0] ss:$16 sps:$4 sm:$0xff]   ;;  %v3240_v48 = vld [vmem:[#allocation5 + $0x684] ss:$16 sps:$4 sm:$0xff]  }
  0x55   :  { %1891 = vmatpush2.bf16.msra.mxu1 %v3174_v47  ;;  %1849 = vmatprep.subr.bf16.mxu0 %v3175_v50  ;;  %v3237_v47 = vld [vmem:[#allocation5 + $0x484] ss:$16 sps:$4 sm:$0xff]   ;;  %v3235_v50 = vld [vmem:[#allocation5 + $0x480] ss:$16 sps:$4 sm:$0xff]  }
  0x56   :  { %1892 = vmatprep.subr.bf16.mxu1 %v3177_v51  ;;  %v3238_v51 = vld [vmem:[#allocation5 + $0x680] ss:$16 sps:$4 sm:$0xff]   ;;  %v3249_v57 = vld [vmem:[#allocation5 + $0x444] ss:$16 sps:$4 sm:$0xff]  }
  0x57   :  { %v3252_v58 = vld [vmem:[#allocation5 + $0x644] ss:$16 sps:$4 sm:$0xff]   ;;  %v3256_v0 = vld [vmem:[#allocation5 + $0x620] ss:$16 sps:$4 sm:$0xff]  }
  0x58   :  { %1850 = vmatpush2.bf16.msra.mxu0 %v3179_v52  ;;  %v3243_v52 = vld [vmem:[#allocation5 + $0x464] ss:$16 sps:$4 sm:$0xff]   ;;  %v3259_v3 = vld [vmem:[#allocation5 + $0x400] ss:$16 sps:$4 sm:$0xff]  }
  0x59   :  { %1893 = vmatpush2.bf16.msra.mxu1 %v3180_v53  ;;  %1851 = vmatprep.subr.bf16.mxu0 %v3181_v54  ;;  %v3246_v53 = vld [vmem:[#allocation5 + $0x664] ss:$16 sps:$4 sm:$0xff]   ;;  %v3241_v54 = vld [vmem:[#allocation5 + $0x460] ss:$16 sps:$4 sm:$0xff]  }
  0x5a   :  { %1894 = vmatprep.subr.bf16.mxu1 %v3183_v55  ;;  %v3244_v55 = vld [vmem:[#allocation5 + $0x660] ss:$16 sps:$4 sm:$0xff]   ;;  %v3255_v61 = vld [vmem:[#allocation5 + $0x424] ss:$16 sps:$4 sm:$0xff]  }
  0x5b   :  { %v3258_v62 = vld [vmem:[#allocation5 + $0x624] ss:$16 sps:$4 sm:$0xff]   ;;  %v3262_v4 = vld [vmem:[#allocation5 + $0x600] ss:$16 sps:$4 sm:$0xff]  }
  0x5c   :  { %1852 = vmatpush2.bf16.msra.mxu0 %v3185_v59  ;;  %v3247_v59 = vld [vmem:[#allocation5 + $0x440] ss:$16 sps:$4 sm:$0xff]   ;;  %v3261_v1 = vld [vmem:[#allocation5 + $0x404] ss:$16 sps:$4 sm:$0xff]  }
  0x5d   :  { %1895 = vmatpush2.bf16.msra.mxu1 %v3186_v60  ;;  %1853 = vmatprep.subr.bf16.mxu0 %v3187_v5  ;;  %v3250_v60 = vld [vmem:[#allocation5 + $0x640] ss:$16 sps:$4 sm:$0xff]   ;;  %v3264_v2 = vld [vmem:[#allocation5 + $0x604] ss:$16 sps:$4 sm:$0xff]  }
  0x5e   :  { %1896 = vmatprep.subr.bf16.mxu1 %v3189_v9  ;;  %v3267_v5 = vld [vmem:[#allocation5 + $0x5e4] ss:$16 sps:$4 sm:$0xff]   ;;  %v3265_v9 = vld [vmem:[#allocation5 + $0x5e0] ss:$16 sps:$4 sm:$0xff]  }
  0x5f   :  { %v3270_v6 = vld [vmem:[#allocation5 + $0x7e4] ss:$16 sps:$4 sm:$0xff]   ;;  %v3268_v10 = vld [vmem:[#allocation5 + $0x7e0] ss:$16 sps:$4 sm:$0xff]  }
  0x60   :  { %1854 = vmatpush2.bf16.msra.mxu0 %v3191_v15  ;;  %v3774_v15 = vrot.slane %v3315_v8, %v3748_v56  ;;  %v3273_v20 = vld [vmem:[#allocation5 + $0x5c4] ss:$16 sps:$4 sm:$0xff]   ;;  %v3271_v31 = vld [vmem:[#allocation5 + $0x5c0] ss:$16 sps:$4 sm:$0xff]   ;;  %v3325_v8 = vld [vmem:[#allocation5 + $0xe8] ss:$16 sps:$4 sm:$0xff]  }
  0x61   :  { %1897 = vmatpush2.bf16.msra.mxu1 %v3192_v16  ;;  %1855 = vmatprep.subr.bf16.mxu0 %v3193_v18  ;;  %v3322_v16 = vld [vmem:[#allocation3 + $0x2c] ss:$16 sps:$4 sm:$0xff]   ;;  %v3274_v32 = vld [vmem:[#allocation5 + $0x7c0] ss:$16 sps:$4 sm:$0xff]  }
  0x62   :  { %1898 = vmatprep.subr.bf16.mxu1 %v3195_v21  ;;  %v3324_v18 = vld [vmem:[#allocation3 + $0x6c] ss:$16 sps:$4 sm:$0xff]   ;;  %v3777_v21 = vrot.slane %v3317_v11, %v3748_v56 }
  0x63   :  { %v3796_v30 = vrot.slane %v3324_v18, %v3748_v56  ;;  %v3336_v11 = vld [vmem:[#allocation5 + $0x2cc] ss:$16 sps:$4 sm:$0xff]  }
  0x64   :  { %1856 = vmatpush2.bf16.msra.mxu0 %v3197_v23  ;;  %v3780_v23 = vrot.slane %v3319_v12, %v3748_v56  ;;  %v3331_v12 = vld [vmem:[#allocation5 + $0xc8] ss:$16 sps:$4 sm:$0xff]   ;;  %v3345_v18 = vld [vmem:[#allocation5 + $0x8c] ss:$16 sps:$4 sm:$0xff]  }
  0x65   :  { %1899 = vmatpush2.bf16.msra.mxu1 %v3198_v24  ;;  %1857 = vmatprep.subr.bf16.mxu0 %v3199_v25  ;;  %v3783_v24 = vrot.slane %v3321_v13, %v3748_v56  ;;  %v3276_v25 = vld [vmem:[#allocation5 + $0x7c4] ss:$16 sps:$4 sm:$0xff]   ;;  %v3334_v13 = vld [vmem:[#allocation5 + $0x2c8] ss:$16 sps:$4 sm:$0xff]  }
  0x66   :  { %1900 = vmatprep.subr.bf16.mxu1 %v3201_v26  ;;  %v170_v26 = vcombine.high %v3771_v14, %v3774_v15  ;;  %v242_v29 = vcombine.high %v3777_v21, %v3780_v23 }
  0x68   :  { %1858 = vmatpush2.bf16.msra.mxu0 %v3203_v27  ;;  %v3788_v27 = vrot.slane %v3322_v16, %v3748_v56  ;;  %v3337_v16 = vld [vmem:[#allocation5 + $0xa8] ss:$16 sps:$4 sm:$0xff]  }
  0x69   :  { %1901 = vmatpush2.bf16.msra.mxu1 %v3204_v28  ;;  %1913 = vmatprep.subr.bf16.mxu0 %v3219_v33  ;;  %v3791_v28 = vrot.slane %v3323_v17, %v3748_v56  ;;  %v3340_v17 = vld [vmem:[#allocation5 + $0x2a8] ss:$16 sps:$4 sm:$0xff]  }
  0x6a   :  { %1956 = vmatprep.subr.bf16.mxu1 %v3222_v34  ;;  %v172_v33 = vcombine.high %v3783_v24, %v3788_v27  ;;  %v3279_v34 = vld [vmem:[#allocation5 + $0x5a4] ss:$16 sps:$4 sm:$0xff]  }
  0x6b   :  { %1860 = vmatmul.mubr.bf16.vlgmr.msra.gmra.mxu0 %v3764_v35 }
  0x6c   :  { %1903 = vmatmul.mubr.bf16.vlgmr.msra.gmra.mxu1 %v3766_v36  ;;  %1914 = vmatpush1.bf16.msra.mxu0 %v3217_v37  ;;  %v3800_v37 = vpack.c.bf16 %v242_v29, %v170_v26  ;;  %v3349_v26 = vld [vmem:[#allocation5 + $0x68] ss:$16 sps:$4 sm:$0xff]  }
  0x6d   :  { %1957 = vmatpush1.bf16.msra.mxu1 %v3220_v38  ;;  %1915 = vmatprep.subr.bf16.mxu0 %v3225_v39  ;;  %v244_v38 = vcombine.high %v3791_v28, %v3796_v30  ;;  %v3282_v39 = vld [vmem:[#allocation5 + $0x7a4] ss:$16 sps:$4 sm:$0xff]   ;;  %v3358_v29 = vld [vmem:[#allocation5 + $0x248] ss:$16 sps:$4 sm:$0xff]  }
  0x6e   :  { %1958 = vmatprep.subr.bf16.mxu1 %v3228_v40  ;;  %1945 = vmatprep.mubr.bf16.mxu0 %v3800_v37  ;;  %v3277_v40 = vld [vmem:[#allocation5 + $0x5a0] ss:$16 sps:$4 sm:$0xff]  }
  0x6f   :  { %v3805_v56 = vpack.c.bf16 %v244_v38, %v172_v33  ;;  %v3364_v33 = vld [vmem:[#allocation5 + $0x228] ss:$16 sps:$4 sm:$0xff]   ;;  %v3372_v38 = vld [vmem:[#allocation5 + $0x20c] ss:$16 sps:$4 sm:$0xff]  }
  0x70   :  { %1916 = vmatpush1.bf16.msra.mxu0 %v3223_v41  ;;  %v3280_v41 = vld [vmem:[#allocation5 + $0x7a0] ss:$16 sps:$4 sm:$0xff]  }
  0x71   :  { %1959 = vmatpush1.bf16.msra.mxu1 %v3226_v42  ;;  %1917 = vmatprep.subr.bf16.mxu0 %v3231_v43  ;;  %v3285_v42 = vld [vmem:[#allocation5 + $0x584] ss:$16 sps:$4 sm:$0xff]  }
  0x72   :  { %1960 = vmatprep.subr.bf16.mxu1 %v3234_v44  ;;  %v3288_v43 = vld [vmem:[#allocation5 + $0x784] ss:$16 sps:$4 sm:$0xff]   ;;  %1988 = vmatprep.mubr.bf16.mxu1 %v3805_v56  ;;  %v3283_v44 = vld [vmem:[#allocation5 + $0x580] ss:$16 sps:$4 sm:$0xff]  }
  0x74   :  { %1918 = vmatpush1.bf16.msra.mxu0 %v3229_v45  ;;  %v3286_v45 = vld [vmem:[#allocation5 + $0x780] ss:$16 sps:$4 sm:$0xff]  }
  0x75   :  { %1961 = vmatpush1.bf16.msra.mxu1 %v3232_v46  ;;  %1919 = vmatprep.subr.bf16.mxu0 %v3237_v47  ;;  %v3291_v46 = vld [vmem:[#allocation5 + $0x564] ss:$16 sps:$4 sm:$0xff]  }
  0x76   :  { %1962 = vmatprep.subr.bf16.mxu1 %v3240_v48  ;;  %v3294_v47 = vld [vmem:[#allocation5 + $0x764] ss:$16 sps:$4 sm:$0xff]   ;;  %v3289_v48 = vld [vmem:[#allocation5 + $0x560] ss:$16 sps:$4 sm:$0xff]  }
  0x78   :  { %1920 = vmatpush1.bf16.msra.mxu0 %v3235_v50  ;;  %v3292_v50 = vld [vmem:[#allocation5 + $0x760] ss:$16 sps:$4 sm:$0xff]  }
  0x79   :  { %1963 = vmatpush1.bf16.msra.mxu1 %v3238_v51  ;;  %1921 = vmatprep.subr.bf16.mxu0 %v3243_v52  ;;  %v3297_v51 = vld [vmem:[#allocation5 + $0x544] ss:$16 sps:$4 sm:$0xff]  }
  0x7a   :  { %1964 = vmatprep.subr.bf16.mxu1 %v3246_v53  ;;  %v3300_v52 = vld [vmem:[#allocation5 + $0x744] ss:$16 sps:$4 sm:$0xff]   ;;  %v3295_v53 = vld [vmem:[#allocation5 + $0x540] ss:$16 sps:$4 sm:$0xff]  }
  0x7c   :  { %1922 = vmatpush1.bf16.msra.mxu0 %v3241_v54  ;;  %v3298_v54 = vld [vmem:[#allocation5 + $0x740] ss:$16 sps:$4 sm:$0xff]  }
  0x7d   :  { %1965 = vmatpush1.bf16.msra.mxu1 %v3244_v55  ;;  %1923 = vmatprep.subr.bf16.mxu0 %v3249_v57  ;;  %v3303_v55 = vld [vmem:[#allocation5 + $0x524] ss:$16 sps:$4 sm:$0xff]  }
  0x7e   :  { %1966 = vmatprep.subr.bf16.mxu1 %v3252_v58  ;;  %v3306_v57 = vld [vmem:[#allocation5 + $0x724] ss:$16 sps:$4 sm:$0xff]   ;;  %v3301_v58 = vld [vmem:[#allocation5 + $0x520] ss:$16 sps:$4 sm:$0xff]  }
  0x80   :  { %1924 = vmatpush1.bf16.msra.mxu0 %v3247_v59  ;;  %v3304_v59 = vld [vmem:[#allocation5 + $0x720] ss:$16 sps:$4 sm:$0xff]  }
  0x81   :  { %1967 = vmatpush1.bf16.msra.mxu1 %v3250_v60  ;;  %1925 = vmatprep.subr.bf16.mxu0 %v3255_v61  ;;  %v3309_v60 = vld [vmem:[#allocation5 + $0x504] ss:$16 sps:$4 sm:$0xff]  }
  0x82   :  { %1968 = vmatprep.subr.bf16.mxu1 %v3258_v62  ;;  %v3312_v61 = vld [vmem:[#allocation5 + $0x704] ss:$16 sps:$4 sm:$0xff]   ;;  %v3307_v62 = vld [vmem:[#allocation5 + $0x500] ss:$16 sps:$4 sm:$0xff]  }
  0x84   :  { %1926 = vmatpush1.bf16.msra.mxu0 %v3253_v63  ;;  %v3310_v63 = vld [vmem:[#allocation5 + $0x700] ss:$16 sps:$4 sm:$0xff]  }
  0x85   :  { %1969 = vmatpush1.bf16.msra.mxu1 %v3256_v0  ;;  %1927 = vmatprep.subr.bf16.mxu0 %v3261_v1  ;;  %v169_v0 = vcombine.low %v3771_v14, %v3774_v15  ;;  %v241_v1 = vcombine.low %v3777_v21, %v3780_v23  ;;  %v3339_v14 = vld [vmem:[#allocation5 + $0xac] ss:$16 sps:$4 sm:$0xff]   ;;  %v3343_v21 = vld [vmem:[#allocation5 + $0x88] ss:$16 sps:$4 sm:$0xff]  }
  0x86   :  { %1970 = vmatprep.subr.bf16.mxu1 %v3264_v2  ;;  %v171_v2 = vcombine.low %v3783_v24, %v3788_v27  ;;  %v3342_v15 = vld [vmem:[#allocation5 + $0x2ac] ss:$16 sps:$4 sm:$0xff]   ;;  %v3346_v23 = vld [vmem:[#allocation5 + $0x288] ss:$16 sps:$4 sm:$0xff]  }
  0x87   :  { %v3351_v24 = vld [vmem:[#allocation5 + $0x6c] ss:$16 sps:$4 sm:$0xff]  }
  0x88   :  { %1928 = vmatpush1.bf16.msra.mxu0 %v3259_v3  ;;  %v243_v3 = vcombine.low %v3791_v28, %v3796_v30  ;;  %v3360_v27 = vld [vmem:[#allocation5 + $0x24c] ss:$16 sps:$4 sm:$0xff]   ;;  %v3355_v28 = vld [vmem:[#allocation5 + $0x48] ss:$16 sps:$4 sm:$0xff]  }
  0x89   :  { %1971 = vmatpush1.bf16.msra.mxu1 %v3262_v4  ;;  %1929 = vmatprep.subr.bf16.mxu0 %v3267_v5  ;;  %v3327_v4 = vld [vmem:[#allocation5 + $0xec] ss:$16 sps:$4 sm:$0xff]  }
  0x8a   :  { %1972 = vmatprep.subr.bf16.mxu1 %v3270_v6  ;;  %v3330_v5 = vld [vmem:[#allocation5 + $0x2ec] ss:$16 sps:$4 sm:$0xff]   ;;  %v3816_v6 = vpack.c.bf16 %v241_v1, %v169_v0  ;;  %v3818_v7 = vpack.c.bf16 %v243_v3, %v171_v2  ;;  %v3403_v1 = vld [vmem:[#allocation5 + $0x148] ss:$16 sps:$4 sm:$0xff]  }
  0x8b   :  { %v3363_v30 = vld [vmem:[#allocation5 + $0x2c] ss:$16 sps:$4 sm:$0xff]   ;;  %v3406_v2 = vld [vmem:[#allocation5 + $0x348] ss:$16 sps:$4 sm:$0xff]  }
  0x8c   :  { %1930 = vmatpush2.bf16.msra.mxu0 %v3265_v9  ;;  %v3328_v9 = vld [vmem:[#allocation5 + $0x2e8] ss:$16 sps:$4 sm:$0xff]   ;;  %v3408_v0 = vld [vmem:[#allocation5 + $0x34c] ss:$16 sps:$4 sm:$0xff]  }
  0x8d   :  { %1973 = vmatpush2.bf16.msra.mxu1 %v3268_v10  ;;  %1931 = vmatprep.subr.bf16.mxu0 %v3273_v20  ;;  %v3333_v10 = vld [vmem:[#allocation5 + $0xcc] ss:$16 sps:$4 sm:$0xff]  }
  0x8e   :  { %1974 = vmatprep.subr.bf16.mxu1 %v3276_v25  ;;  %v3348_v20 = vld [vmem:[#allocation5 + $0x28c] ss:$16 sps:$4 sm:$0xff]  }
  0x8f   :  { %v3354_v25 = vld [vmem:[#allocation5 + $0x26c] ss:$16 sps:$4 sm:$0xff]  }
  0x90   :  { %1932 = vmatpush2.bf16.msra.mxu0 %v3271_v31  ;;  %v3366_v31 = vld [vmem:[#allocation5 + $0x22c] ss:$16 sps:$4 sm:$0xff]  }
  0x91   :  { %1975 = vmatpush2.bf16.msra.mxu1 %v3274_v32  ;;  %1933 = vmatprep.subr.bf16.mxu0 %v3279_v34  ;;  %v3361_v32 = vld [vmem:[#allocation5 + $0x28] ss:$16 sps:$4 sm:$0xff]   ;;  %v3369_v34 = vld [vmem:[#allocation5 + $0xc] ss:$16 sps:$4 sm:$0xff]  }
  0x92   :  { %1976 = vmatprep.subr.bf16.mxu1 %v3282_v39  ;;  %v3367_v39 = vld [vmem:[#allocation5 + $0x8] ss:$16 sps:$4 sm:$0xff]   ;;  %v3411_v3 = vld [vmem:[#allocation5 + $0x12c] ss:$16 sps:$4 sm:$0xff]  }
  0x94   :  { %1934 = vmatpush2.bf16.msra.mxu0 %v3277_v40  ;;  %v3370_v40 = vld [vmem:[#allocation5 + $0x208] ss:$16 sps:$4 sm:$0xff]  }
  0x95   :  { %1977 = vmatpush2.bf16.msra.mxu1 %v3280_v41  ;;  %1935 = vmatprep.subr.bf16.mxu0 %v3285_v42  ;;  %v3375_v41 = vld [vmem:[#allocation5 + $0x1ec] ss:$16 sps:$4 sm:$0xff]  }
  0x96   :  { %1978 = vmatprep.subr.bf16.mxu1 %v3288_v43  ;;  %v3378_v42 = vld [vmem:[#allocation5 + $0x3ec] ss:$16 sps:$4 sm:$0xff]   ;;  %v3373_v43 = vld [vmem:[#allocation5 + $0x1e8] ss:$16 sps:$4 sm:$0xff]  }
  0x98   :  { %1936 = vmatpush2.bf16.msra.mxu0 %v3283_v44  ;;  %v3376_v44 = vld [vmem:[#allocation5 + $0x3e8] ss:$16 sps:$4 sm:$0xff]  }
  0x99   :  { %1979 = vmatpush2.bf16.msra.mxu1 %v3286_v45  ;;  %1937 = vmatprep.subr.bf16.mxu0 %v3291_v46  ;;  %v3381_v45 = vld [vmem:[#allocation5 + $0x1cc] ss:$16 sps:$4 sm:$0xff]  }
  0x9a   :  { %1980 = vmatprep.subr.bf16.mxu1 %v3294_v47  ;;  %v3384_v46 = vld [vmem:[#allocation5 + $0x3cc] ss:$16 sps:$4 sm:$0xff]   ;;  %v3379_v47 = vld [vmem:[#allocation5 + $0x1c8] ss:$16 sps:$4 sm:$0xff]  }
  0x9c   :  { %1938 = vmatpush2.bf16.msra.mxu0 %v3289_v48  ;;  %v3382_v48 = vld [vmem:[#allocation5 + $0x3c8] ss:$16 sps:$4 sm:$0xff]  }
  0x9d   :  { %1981 = vmatpush2.bf16.msra.mxu1 %v3292_v50  ;;  %1939 = vmatprep.subr.bf16.mxu0 %v3297_v51  ;;  %v3387_v50 = vld [vmem:[#allocation5 + $0x1ac] ss:$16 sps:$4 sm:$0xff]  }
  0x9e   :  { %1982 = vmatprep.subr.bf16.mxu1 %v3300_v52  ;;  %v3390_v51 = vld [vmem:[#allocation5 + $0x3ac] ss:$16 sps:$4 sm:$0xff]   ;;  %v3385_v52 = vld [vmem:[#allocation5 + $0x1a8] ss:$16 sps:$4 sm:$0xff]  }
  0xa0   :  { %1940 = vmatpush2.bf16.msra.mxu0 %v3295_v53  ;;  %v3388_v53 = vld [vmem:[#allocation5 + $0x3a8] ss:$16 sps:$4 sm:$0xff]  }
  0xa1   :  { %1983 = vmatpush2.bf16.msra.mxu1 %v3298_v54  ;;  %1941 = vmatprep.subr.bf16.mxu0 %v3303_v55  ;;  %v3393_v54 = vld [vmem:[#allocation5 + $0x18c] ss:$16 sps:$4 sm:$0xff]  }
  0xa2   :  { %1984 = vmatprep.subr.bf16.mxu1 %v3306_v57  ;;  %v3396_v55 = vld [vmem:[#allocation5 + $0x38c] ss:$16 sps:$4 sm:$0xff]   ;;  %v3391_v57 = vld [vmem:[#allocation5 + $0x188] ss:$16 sps:$4 sm:$0xff]  }
  0xa4   :  { %1942 = vmatpush2.bf16.msra.mxu0 %v3301_v58  ;;  %v3394_v58 = vld [vmem:[#allocation5 + $0x388] ss:$16 sps:$4 sm:$0xff]  }
  0xa5   :  { %1985 = vmatpush2.bf16.msra.mxu1 %v3304_v59  ;;  %1943 = vmatprep.subr.bf16.mxu0 %v3309_v60  ;;  %v3399_v59 = vld [vmem:[#allocation5 + $0x16c] ss:$16 sps:$4 sm:$0xff]  }
  0xa6   :  { %1986 = vmatprep.subr.bf16.mxu1 %v3312_v61  ;;  %v3402_v60 = vld [vmem:[#allocation5 + $0x36c] ss:$16 sps:$4 sm:$0xff]   ;;  %v3397_v61 = vld [vmem:[#allocation5 + $0x168] ss:$16 sps:$4 sm:$0xff]  }
  0xa8   :  { %1944 = vmatpush2.bf16.msra.mxu0 %v3307_v62  ;;  %v3400_v62 = vld [vmem:[#allocation5 + $0x368] ss:$16 sps:$4 sm:$0xff]  }
  0xa9   :  { %1987 = vmatpush2.bf16.msra.mxu1 %v3310_v63  ;;  %1999 = vmatprep.subr.bf16.mxu0 %v3327_v4  ;;  %v3405_v63 = vld [vmem:[#allocation5 + $0x14c] ss:$16 sps:$4 sm:$0xff]  }
  0xaa   :  { %2042 = vmatprep.subr.bf16.mxu1 %v3330_v5  ;;  %v3414_v4 = vld [vmem:[#allocation5 + $0x32c] ss:$16 sps:$4 sm:$0xff]   ;;  %v3409_v5 = vld [vmem:[#allocation5 + $0x128] ss:$16 sps:$4 sm:$0xff]  }
  0xab   :  { %1946 = vmatmul.mubr.bf16.vlgmr.msra.gmra.mxu0 %v3816_v6 }
  0xac   :  { %1989 = vmatmul.mubr.bf16.vlgmr.msra.gmra.mxu1 %v3818_v7  ;;  %2000 = vmatpush1.bf16.msra.mxu0 %v3325_v8  ;;  %v3412_v8 = vld [vmem:[#allocation5 + $0x328] ss:$16 sps:$4 sm:$0xff]  }
  0xad   :  { %2043 = vmatpush1.bf16.msra.mxu1 %v3328_v9  ;;  %2001 = vmatprep.subr.bf16.mxu0 %v3333_v10  ;;  %v3417_v9 = vld [vmem:[#allocation5 + $0x10c] ss:$16 sps:$4 sm:$0xff]  }
  0xae   :  { %2044 = vmatprep.subr.bf16.mxu1 %v3336_v11  ;;  %2031 = vmatprep.mubr.bf16.mxu0 %v3758_v19  ;;  %v3352_v19 = vld [vmem:[#allocation5 + $0x268] ss:$16 sps:$4 sm:$0xff]   ;;  %v3420_v10 = vld [vmem:[#allocation5 + $0x30c] ss:$16 sps:$4 sm:$0xff]  }
  0xaf   :  { %2074 = vmatprep.mubr.bf16.mxu1 %v3761_v22  ;;  %v3357_v22 = vld [vmem:[#allocation5 + $0x4c] ss:$16 sps:$4 sm:$0xff]   ;;  %v3415_v11 = vld [vmem:[#allocation5 + $0x108] ss:$16 sps:$4 sm:$0xff]  }
  0xb0   :  { %2002 = vmatpush1.bf16.msra.mxu0 %v3331_v12  ;;  %v3418_v12 = vld [vmem:[#allocation5 + $0x308] ss:$16 sps:$4 sm:$0xff]  }
  0xb1   :  { %2045 = vmatpush1.bf16.msra.mxu1 %v3334_v13  ;;  %2003 = vmatprep.subr.bf16.mxu0 %v3339_v14  ;;  %v3423_v13 = vld [vmem:[#allocation5 + $0x4ec] ss:$16 sps:$4 sm:$0xff]  }
  0xb2   :  { %2046 = vmatprep.subr.bf16.mxu1 %v3342_v15  ;;  %v3426_v14 = vld [vmem:[#allocation5 + $0x6ec] ss:$16 sps:$4 sm:$0xff]   ;;  %v3421_v15 = vld [vmem:[#allocation5 + $0x4e8] ss:$16 sps:$4 sm:$0xff]  }
  0xb4   :  { %2004 = vmatpush1.bf16.msra.mxu0 %v3337_v16  ;;  %v3424_v16 = vld [vmem:[#allocation5 + $0x6e8] ss:$16 sps:$4 sm:$0xff]  }
  0xb5   :  { %2047 = vmatpush1.bf16.msra.mxu1 %v3340_v17  ;;  %2005 = vmatprep.subr.bf16.mxu0 %v3345_v18  ;;  %v3429_v17 = vld [vmem:[#allocation5 + $0x4cc] ss:$16 sps:$4 sm:$0xff]  }
  0xb6   :  { %2048 = vmatprep.subr.bf16.mxu1 %v3348_v20  ;;  %v3432_v18 = vld [vmem:[#allocation5 + $0x6cc] ss:$16 sps:$4 sm:$0xff]   ;;  %v3427_v20 = vld [vmem:[#allocation5 + $0x4c8] ss:$16 sps:$4 sm:$0xff]  }
  0xb8   :  { %2006 = vmatpush1.bf16.msra.mxu0 %v3343_v21  ;;  %v3430_v21 = vld [vmem:[#allocation5 + $0x6c8] ss:$16 sps:$4 sm:$0xff]  }
  0xb9   :  { %2049 = vmatpush1.bf16.msra.mxu1 %v3346_v23  ;;  %2007 = vmatprep.subr.bf16.mxu0 %v3351_v24  ;;  %v3435_v23 = vld [vmem:[#allocation5 + $0x4ac] ss:$16 sps:$4 sm:$0xff]  }
  0xba   :  { %2050 = vmatprep.subr.bf16.mxu1 %v3354_v25  ;;  %v3438_v24 = vld [vmem:[#allocation5 + $0x6ac] ss:$16 sps:$4 sm:$0xff]   ;;  %v3433_v25 = vld [vmem:[#allocation5 + $0x4a8] ss:$16 sps:$4 sm:$0xff]  }
  0xbc   :  { %2008 = vmatpush1.bf16.msra.mxu0 %v3349_v26  ;;  %v3436_v26 = vld [vmem:[#allocation5 + $0x6a8] ss:$16 sps:$4 sm:$0xff]  }
  0xbd   :  { %2051 = vmatpush1.bf16.msra.mxu1 %v3352_v19  ;;  %2009 = vmatprep.subr.bf16.mxu0 %v3357_v22  ;;  %v3441_v19 = vld [vmem:[#allocation5 + $0x48c] ss:$16 sps:$4 sm:$0xff]   ;;  %v3442_v22 = vld [vmem:[#allocation5 + $0x688] ss:$16 sps:$4 sm:$0xff]  }
  0xbe   :  { %2052 = vmatprep.subr.bf16.mxu1 %v3360_v27  ;;  %v3447_v27 = vld [vmem:[#allocation5 + $0x46c] ss:$16 sps:$4 sm:$0xff]  }
  0xc0   :  { %2010 = vmatpush1.bf16.msra.mxu0 %v3355_v28  ;;  %v3450_v28 = vld [vmem:[#allocation5 + $0x66c] ss:$16 sps:$4 sm:$0xff]  }
  0xc1   :  { %2053 = vmatpush1.bf16.msra.mxu1 %v3358_v29  ;;  %2011 = vmatprep.subr.bf16.mxu0 %v3363_v30  ;;  %v3445_v29 = vld [vmem:[#allocation5 + $0x468] ss:$16 sps:$4 sm:$0xff]  }
  0xc2   :  { %2054 = vmatprep.subr.bf16.mxu1 %v3366_v31  ;;  %v3448_v30 = vld [vmem:[#allocation5 + $0x668] ss:$16 sps:$4 sm:$0xff]   ;;  %v3453_v31 = vld [vmem:[#allocation5 + $0x44c] ss:$16 sps:$4 sm:$0xff]  }
  0xc4   :  { %2012 = vmatpush1.bf16.msra.mxu0 %v3361_v32  ;;  %v3454_v32 = vld [vmem:[#allocation5 + $0x648] ss:$16 sps:$4 sm:$0xff]  }
  0xc5   :  { %2055 = vmatpush1.bf16.msra.mxu1 %v3364_v33  ;;  %2013 = vmatprep.subr.bf16.mxu0 %v3369_v34  ;;  %v3459_v33 = vld [vmem:[#allocation5 + $0x42c] ss:$16 sps:$4 sm:$0xff]  }
  0xc6   :  { %2056 = vmatprep.subr.bf16.mxu1 %v3372_v38  ;;  %v3462_v34 = vld [vmem:[#allocation5 + $0x62c] ss:$16 sps:$4 sm:$0xff]   ;;  %v3457_v38 = vld [vmem:[#allocation5 + $0x428] ss:$16 sps:$4 sm:$0xff]  }
  0xc8   :  { %2014 = vmatpush1.bf16.msra.mxu0 %v3367_v39  ;;  %v3460_v39 = vld [vmem:[#allocation5 + $0x628] ss:$16 sps:$4 sm:$0xff]  }
  0xc9   :  { %2057 = vmatpush1.bf16.msra.mxu1 %v3370_v40  ;;  %2015 = vmatprep.subr.bf16.mxu0 %v3375_v41  ;;  %v3465_v40 = vld [vmem:[#allocation5 + $0x40c] ss:$16 sps:$4 sm:$0xff]  }
  0xca   :  { %2058 = vmatprep.subr.bf16.mxu1 %v3378_v42  ;;  %v3468_v41 = vld [vmem:[#allocation5 + $0x60c] ss:$16 sps:$4 sm:$0xff]   ;;  %v3463_v42 = vld [vmem:[#allocation5 + $0x408] ss:$16 sps:$4 sm:$0xff]  }
  0xcc   :  { %2016 = vmatpush2.bf16.msra.mxu0 %v3373_v43  ;;  %v3466_v43 = vld [vmem:[#allocation5 + $0x608] ss:$16 sps:$4 sm:$0xff]  }
  0xcd   :  { %2059 = vmatpush2.bf16.msra.mxu1 %v3376_v44  ;;  %2017 = vmatprep.subr.bf16.mxu0 %v3381_v45  ;;  %v3471_v44 = vld [vmem:[#allocation5 + $0x5ec] ss:$16 sps:$4 sm:$0xff]  }
  0xce   :  { %2060 = vmatprep.subr.bf16.mxu1 %v3384_v46  ;;  %v3474_v45 = vld [vmem:[#allocation5 + $0x7ec] ss:$16 sps:$4 sm:$0xff]   ;;  %v3469_v46 = vld [vmem:[#allocation5 + $0x5e8] ss:$16 sps:$4 sm:$0xff]  }
  0xd0   :  { %2018 = vmatpush2.bf16.msra.mxu0 %v3379_v47  ;;  %v3472_v47 = vld [vmem:[#allocation5 + $0x7e8] ss:$16 sps:$4 sm:$0xff]  }
  0xd1   :  { %2061 = vmatpush2.bf16.msra.mxu1 %v3382_v48  ;;  %2019 = vmatprep.subr.bf16.mxu0 %v3387_v50  ;;  %v3477_v48 = vld [vmem:[#allocation5 + $0x5cc] ss:$16 sps:$4 sm:$0xff]  }
  0xd2   :  { %2062 = vmatprep.subr.bf16.mxu1 %v3390_v51  ;;  %v3480_v50 = vld [vmem:[#allocation5 + $0x7cc] ss:$16 sps:$4 sm:$0xff]   ;;  %v3475_v51 = vld [vmem:[#allocation5 + $0x5c8] ss:$16 sps:$4 sm:$0xff]  }
  0xd4   :  { %2020 = vmatpush2.bf16.msra.mxu0 %v3385_v52  ;;  %v3478_v52 = vld [vmem:[#allocation5 + $0x7c8] ss:$16 sps:$4 sm:$0xff]  }
  0xd5   :  { %2063 = vmatpush2.bf16.msra.mxu1 %v3388_v53  ;;  %2021 = vmatprep.subr.bf16.mxu0 %v3393_v54  ;;  %v3483_v53 = vld [vmem:[#allocation5 + $0x5ac] ss:$16 sps:$4 sm:$0xff]  }
  0xd6   :  { %2064 = vmatprep.subr.bf16.mxu1 %v3396_v55  ;;  %v3486_v54 = vld [vmem:[#allocation5 + $0x7ac] ss:$16 sps:$4 sm:$0xff]   ;;  %v3481_v55 = vld [vmem:[#allocation5 + $0x5a8] ss:$16 sps:$4 sm:$0xff]  }
  0xd8   :  { %2022 = vmatpush2.bf16.msra.mxu0 %v3391_v57  ;;  %v3484_v57 = vld [vmem:[#allocation5 + $0x7a8] ss:$16 sps:$4 sm:$0xff]  }
  0xd9   :  { %2065 = vmatpush2.bf16.msra.mxu1 %v3394_v58  ;;  %2023 = vmatprep.subr.bf16.mxu0 %v3399_v59  ;;  %v3489_v58 = vld [vmem:[#allocation5 + $0x58c] ss:$16 sps:$4 sm:$0xff]  }
  0xda   :  { %2066 = vmatprep.subr.bf16.mxu1 %v3402_v60  ;;  %v3492_v59 = vld [vmem:[#allocation5 + $0x78c] ss:$16 sps:$4 sm:$0xff]   ;;  %v3487_v60 = vld [vmem:[#allocation5 + $0x588] ss:$16 sps:$4 sm:$0xff]  }
  0xdc   :  { %2024 = vmatpush2.bf16.msra.mxu0 %v3397_v61  ;;  %v3490_v61 = vld [vmem:[#allocation5 + $0x788] ss:$16 sps:$4 sm:$0xff]  }
  0xdd   :  { %2067 = vmatpush2.bf16.msra.mxu1 %v3400_v62  ;;  %2025 = vmatprep.subr.bf16.mxu0 %v3405_v63  ;;  %v3495_v62 = vld [vmem:[#allocation5 + $0x56c] ss:$16 sps:$4 sm:$0xff]  }
  0xde   :  { %2068 = vmatprep.subr.bf16.mxu1 %v3408_v0  ;;  %v3498_v63 = vld [vmem:[#allocation5 + $0x76c] ss:$16 sps:$4 sm:$0xff]   ;;  %v3493_v0 = vld [vmem:[#allocation5 + $0x568] ss:$16 sps:$4 sm:$0xff]  }
  0xe0   :  { %2026 = vmatpush2.bf16.msra.mxu0 %v3403_v1  ;;  %v3496_v1 = vld [vmem:[#allocation5 + $0x768] ss:$16 sps:$4 sm:$0xff]  }
  0xe1   :  { %2069 = vmatpush2.bf16.msra.mxu1 %v3406_v2  ;;  %2027 = vmatprep.subr.bf16.mxu0 %v3411_v3  ;;  %v3501_v2 = vld [vmem:[#allocation5 + $0x54c] ss:$16 sps:$4 sm:$0xff]  }
  0xe2   :  { %2070 = vmatprep.subr.bf16.mxu1 %v3414_v4  ;;  %v3504_v3 = vld [vmem:[#allocation5 + $0x74c] ss:$16 sps:$4 sm:$0xff]   ;;  %v3499_v4 = vld [vmem:[#allocation5 + $0x548] ss:$16 sps:$4 sm:$0xff]  }
  0xe4   :  { %2028 = vmatpush2.bf16.msra.mxu0 %v3409_v5  ;;  %v3502_v5 = vld [vmem:[#allocation5 + $0x748] ss:$16 sps:$4 sm:$0xff]  }
  0xe5   :  { %2071 = vmatpush2.bf16.msra.mxu1 %v3412_v8  ;;  %2029 = vmatprep.subr.bf16.mxu0 %v3417_v9  ;;  %v3507_v8 = vld [vmem:[#allocation5 + $0x52c] ss:$16 sps:$4 sm:$0xff]  }
  0xe6   :  { %2072 = vmatprep.subr.bf16.mxu1 %v3420_v10  ;;  %v3510_v9 = vld [vmem:[#allocation5 + $0x72c] ss:$16 sps:$4 sm:$0xff]   ;;  %v3505_v10 = vld [vmem:[#allocation5 + $0x528] ss:$16 sps:$4 sm:$0xff]  }
  0xe8   :  { %2030 = vmatpush2.bf16.msra.mxu0 %v3415_v11  ;;  %v3508_v11 = vld [vmem:[#allocation5 + $0x728] ss:$16 sps:$4 sm:$0xff]  }
  0xe9   :  { %2073 = vmatpush2.bf16.msra.mxu1 %v3418_v12  ;;  %2085 = vmatprep.subr.bf16.mxu0 %v3423_v13  ;;  %v3513_v12 = vld [vmem:[#allocation5 + $0x50c] ss:$16 sps:$4 sm:$0xff]  }
  0xea   :  { %2128 = vmatprep.subr.bf16.mxu1 %v3426_v14  ;;  %v3516_v13 = vld [vmem:[#allocation5 + $0x70c] ss:$16 sps:$4 sm:$0xff]   ;;  %v3511_v14 = vld [vmem:[#allocation5 + $0x508] ss:$16 sps:$4 sm:$0xff]  }
  0xeb   :  { %2032 = vmatmul.mubr.bf16.vlgmr.msra.gmra.mxu0 %v3764_v35  ;;  %v3444_v35 = vld [vmem:[#allocation5 + $0x68c] ss:$16 sps:$4 sm:$0xff]  }
  0xec   :  { %2075 = vmatmul.mubr.bf16.vlgmr.msra.gmra.mxu1 %v3766_v36  ;;  %2086 = vmatpush1.bf16.msra.mxu0 %v3421_v15  ;;  %v3439_v36 = vld [vmem:[#allocation5 + $0x488] ss:$16 sps:$4 sm:$0xff]  }
  0xed   :  { %2129 = vmatpush1.bf16.msra.mxu1 %v3424_v16  ;;  %2087 = vmatprep.subr.bf16.mxu0 %v3429_v17  ;;  %v3514_v15 = vld [vmem:[#allocation5 + $0x708] ss:$16 sps:$4 sm:$0xff]   ;;  %v3519_v16 = vld [vmem:[#allocation7 + $0x74] ss:$8 sps:$4 sm:$0xff]  }
  0xee   :  { %2130 = vmatprep.subr.bf16.mxu1 %v3432_v18  ;;  %2117 = vmatprep.mubr.bf16.mxu0 %v3800_v37  ;;  %v3456_v37 = vld [vmem:[#allocation5 + $0x64c] ss:$16 sps:$4 sm:$0xff]   ;;  %v3517_v17 = vld [vmem:[#allocation7 + $0x70] ss:$8 sps:$4 sm:$0xff]  }
  0xef   :  { %2160 = vmatprep.mubr.bf16.mxu1 %v3805_v56  ;;  %v3451_v56 = vld [vmem:[#allocation5 + $0x448] ss:$16 sps:$4 sm:$0xff]   ;;  %v3522_v18 = vld [vmem:[#allocation7 + $0x64] ss:$8 sps:$4 sm:$0xff]  }
  0xf0   :  { %2088 = vmatpush1.bf16.msra.mxu0 %v3427_v20  ;;  %v3520_v20 = vld [vmem:[#allocation7 + $0x60] ss:$8 sps:$4 sm:$0xff]  }
  0xf1   :  { %2131 = vmatpush1.bf16.msra.mxu1 %v3430_v21  ;;  %2089 = vmatprep.subr.bf16.mxu0 %v3435_v23  ;;  %v3525_v21 = vld [vmem:[#allocation7 + $0x54] ss:$8 sps:$4 sm:$0xff]   ;;  %v3523_v23 = vld [vmem:[#allocation7 + $0x50] ss:$8 sps:$4 sm:$0xff]  }
  0xf2   :  { %2132 = vmatprep.subr.bf16.mxu1 %v3438_v24  ;;  %v3528_v24 = vld [vmem:[#allocation7 + $0x44] ss:$8 sps:$4 sm:$0xff]  }
  0xf4   :  { %2090 = vmatpush1.bf16.msra.mxu0 %v3433_v25  ;;  %v3526_v25 = vld [vmem:[#allocation7 + $0x40] ss:$8 sps:$4 sm:$0xff]  }
  0xf5   :  { %2133 = vmatpush1.bf16.msra.mxu1 %v3436_v26  ;;  %2091 = vmatprep.subr.bf16.mxu0 %v3441_v19  ;;  %v3565_v26 = vld [vmem:[#allocation7 + $0x170] ss:$8 sps:$4 sm:$0xff]   ;;  %v3567_v19 = vld [vmem:[#allocation7 + $0x174] ss:$8 sps:$4 sm:$0xff]  }
  0xf6   :  { %2134 = vmatprep.subr.bf16.mxu1 %v3444_v35  ;;  %v3531_v35 = vld [vmem:[#allocation7 + $0x34] ss:$8 sps:$4 sm:$0xff]  }
  0xf8   :  { %2092 = vmatpush1.bf16.msra.mxu0 %v3439_v36  ;;  %v3570_v36 = vld [vmem:[#allocation7 + $0x164] ss:$8 sps:$4 sm:$0xff]  }
  0xf9   :  { %2135 = vmatpush1.bf16.msra.mxu1 %v3442_v22  ;;  %2093 = vmatprep.subr.bf16.mxu0 %v3447_v27  ;;  %v3573_v22 = vld [vmem:[#allocation7 + $0x154] ss:$8 sps:$4 sm:$0xff]   ;;  %v3534_v27 = vld [vmem:[#allocation7 + $0x24] ss:$8 sps:$4 sm:$0xff]  }
  0xfa   :  { %2136 = vmatprep.subr.bf16.mxu1 %v3450_v28  ;;  %v3571_v28 = vld [vmem:[#allocation7 + $0x150] ss:$8 sps:$4 sm:$0xff]  }
  0xfc   :  { %2094 = vmatpush1.bf16.msra.mxu0 %v3445_v29  ;;  %v3532_v29 = vld [vmem:[#allocation7 + $0x20] ss:$8 sps:$4 sm:$0xff]  }
  0xfd   :  { %2137 = vmatpush1.bf16.msra.mxu1 %v3448_v30  ;;  %2095 = vmatprep.subr.bf16.mxu0 %v3453_v31  ;;  %v3576_v30 = vld [vmem:[#allocation7 + $0x144] ss:$8 sps:$4 sm:$0xff]   ;;  %v3537_v31 = vld [vmem:[#allocation7 + $0x14] ss:$8 sps:$4 sm:$0xff]  }
  0xfe   :  { %2138 = vmatprep.subr.bf16.mxu1 %v3456_v37  ;;  %v3574_v37 = vld [vmem:[#allocation7 + $0x140] ss:$8 sps:$4 sm:$0xff]  }
 0x100   :  { %2096 = vmatpush1.bf16.msra.mxu0 %v3451_v56  ;;  %v3535_v56 = vld [vmem:[#allocation7 + $0x10] ss:$8 sps:$4 sm:$0xff]  }
 0x101   :  { %2139 = vmatpush1.bf16.msra.mxu1 %v3454_v32  ;;  %2097 = vmatprep.subr.bf16.mxu0 %v3459_v33  ;;  %v3579_v32 = vld [vmem:[#allocation7 + $0x134] ss:$8 sps:$4 sm:$0xff]   ;;  %v3540_v33 = vld [vmem:[#allocation7 + $0x4] ss:$8 sps:$4 sm:$0xff]  }
 0x102   :  { %2140 = vmatprep.subr.bf16.mxu1 %v3462_v34  ;;  %v3577_v34 = vld [vmem:[#allocation7 + $0x130] ss:$8 sps:$4 sm:$0xff]  }
 0x104   :  { %2098 = vmatpush1.bf16.msra.mxu0 %v3457_v38  ;;  %v3538_v38 = vld [vmem:[#allocation7] ss:$8 sps:$4 sm:$0xff]  }
 0x105   :  { %2141 = vmatpush1.bf16.msra.mxu1 %v3460_v39  ;;  %2099 = vmatprep.subr.bf16.mxu0 %v3465_v40  ;;  %v3582_v39 = vld [vmem:[#allocation7 + $0x124] ss:$8 sps:$4 sm:$0xff]   ;;  %v3543_v40 = vld [vmem:[#allocation7 + $0xf4] ss:$8 sps:$4 sm:$0xff]  }
 0x106   :  { %2142 = vmatprep.subr.bf16.mxu1 %v3468_v41  ;;  %v3580_v41 = vld [vmem:[#allocation7 + $0x120] ss:$8 sps:$4 sm:$0xff]  }
 0x108   :  { %2100 = vmatpush1.bf16.msra.mxu0 %v3463_v42  ;;  %v3541_v42 = vld [vmem:[#allocation7 + $0xf0] ss:$8 sps:$4 sm:$0xff]  }
 0x109   :  { %2143 = vmatpush1.bf16.msra.mxu1 %v3466_v43  ;;  %2101 = vmatprep.subr.bf16.mxu0 %v3471_v44  ;;  %v3585_v43 = vld [vmem:[#allocation7 + $0x114] ss:$8 sps:$4 sm:$0xff]   ;;  %v3546_v44 = vld [vmem:[#allocation7 + $0xe4] ss:$8 sps:$4 sm:$0xff]  }
 0x10a   :  { %2144 = vmatprep.subr.bf16.mxu1 %v3474_v45  ;;  %v3583_v45 = vld [vmem:[#allocation7 + $0x110] ss:$8 sps:$4 sm:$0xff]  }
 0x10c   :  { %2102 = vmatpush2.bf16.msra.mxu0 %v3469_v46  ;;  %v3544_v46 = vld [vmem:[#allocation7 + $0xe0] ss:$8 sps:$4 sm:$0xff]  }
 0x10d   :  { %2145 = vmatpush2.bf16.msra.mxu1 %v3472_v47  ;;  %2103 = vmatprep.subr.bf16.mxu0 %v3477_v48  ;;  %v3588_v47 = vld [vmem:[#allocation7 + $0x104] ss:$8 sps:$4 sm:$0xff]   ;;  %v3549_v48 = vld [vmem:[#allocation7 + $0xd4] ss:$8 sps:$4 sm:$0xff]  }
 0x10e   :  { %2146 = vmatprep.subr.bf16.mxu1 %v3480_v50  ;;  %v3586_v50 = vld [vmem:[#allocation7 + $0x100] ss:$8 sps:$4 sm:$0xff]  }
 0x110   :  { %2104 = vmatpush2.bf16.msra.mxu0 %v3475_v51  ;;  %v3547_v51 = vld [vmem:[#allocation7 + $0xd0] ss:$8 sps:$4 sm:$0xff]  }
 0x111   :  { %2147 = vmatpush2.bf16.msra.mxu1 %v3478_v52  ;;  %2105 = vmatprep.subr.bf16.mxu0 %v3483_v53  ;;  %v3591_v52 = vld [vmem:[#allocation7 + $0x1f4] ss:$8 sps:$4 sm:$0xff]   ;;  %v3552_v53 = vld [vmem:[#allocation7 + $0xc4] ss:$8 sps:$4 sm:$0xff]  }
 0x112   :  { %2148 = vmatprep.subr.bf16.mxu1 %v3486_v54  ;;  %v3589_v54 = vld [vmem:[#allocation7 + $0x1f0] ss:$8 sps:$4 sm:$0xff]  }
 0x114   :  { %2106 = vmatpush2.bf16.msra.mxu0 %v3481_v55  ;;  %v3550_v55 = vld [vmem:[#allocation7 + $0xc0] ss:$8 sps:$4 sm:$0xff]  }
 0x115   :  { %2149 = vmatpush2.bf16.msra.mxu1 %v3484_v57  ;;  %2107 = vmatprep.subr.bf16.mxu0 %v3489_v58  ;;  %v3594_v57 = vld [vmem:[#allocation7 + $0x1e4] ss:$8 sps:$4 sm:$0xff]   ;;  %v3555_v58 = vld [vmem:[#allocation7 + $0xb4] ss:$8 sps:$4 sm:$0xff]  }
 0x116   :  { %2150 = vmatprep.subr.bf16.mxu1 %v3492_v59  ;;  %v3592_v59 = vld [vmem:[#allocation7 + $0x1e0] ss:$8 sps:$4 sm:$0xff]  }
 0x118   :  { %2108 = vmatpush2.bf16.msra.mxu0 %v3487_v60  ;;  %v3553_v60 = vld [vmem:[#allocation7 + $0xb0] ss:$8 sps:$4 sm:$0xff]  }
 0x119   :  { %2151 = vmatpush2.bf16.msra.mxu1 %v3490_v61  ;;  %2109 = vmatprep.subr.bf16.mxu0 %v3495_v62  ;;  %v3597_v61 = vld [vmem:[#allocation7 + $0x1d4] ss:$8 sps:$4 sm:$0xff]   ;;  %v3558_v62 = vld [vmem:[#allocation7 + $0xa4] ss:$8 sps:$4 sm:$0xff]  }
 0x11a   :  { %2152 = vmatprep.subr.bf16.mxu1 %v3498_v63  ;;  %v3595_v63 = vld [vmem:[#allocation7 + $0x1d0] ss:$8 sps:$4 sm:$0xff]  }
 0x11c   :  { %2110 = vmatpush2.bf16.msra.mxu0 %v3493_v0  ;;  %v3556_v0 = vld [vmem:[#allocation7 + $0xa0] ss:$8 sps:$4 sm:$0xff]  }
 0x11d   :  { %2153 = vmatpush2.bf16.msra.mxu1 %v3496_v1  ;;  %2111 = vmatprep.subr.bf16.mxu0 %v3501_v2  ;;  %v3600_v1 = vld [vmem:[#allocation7 + $0x1c4] ss:$8 sps:$4 sm:$0xff]  }
 0x11e   :  { %2154 = vmatprep.subr.bf16.mxu1 %v3504_v3 }
 0x120   :  { %2112 = vmatpush2.bf16.msra.mxu0 %v3499_v4  ;;  %v3561_v4 = vld [vmem:[#allocation7 + $0x94] ss:$8 sps:$4 sm:$0xff]  }
 0x121   :  { %2155 = vmatpush2.bf16.msra.mxu1 %v3502_v5  ;;  %2113 = vmatprep.subr.bf16.mxu0 %v3507_v8  ;;  %v3598_v5 = vld [vmem:[#allocation7 + $0x1c0] ss:$8 sps:$4 sm:$0xff]   ;;  %v3831_v8 = vsub.s32 0, %v3745_v49 }
 0x122   :  { %2156 = vmatprep.subr.bf16.mxu1 %v3510_v9  ;;  %v3834_v9 = vsub.s32 1, %v3745_v49 }
 0x124   :  { %2114 = vmatpush2.bf16.msra.mxu0 %v3505_v10  ;;  %v3559_v10 = vld [vmem:[#allocation7 + $0x90] ss:$8 sps:$4 sm:$0xff]  }
 0x125   :  { %2157 = vmatpush2.bf16.msra.mxu1 %v3508_v11  ;;  %2115 = vmatprep.subr.bf16.mxu0 %v3513_v12  ;;  %v3839_v11 = vld [vmem:[%s3864_s2] sm:$0xf] }
 0x126   :  { %2158 = vmatprep.subr.bf16.mxu1 %v3516_v13 }
 0x128   :  { %2116 = vmatpush2.bf16.msra.mxu0 %v3511_v14  ;;  %v3564_v14 = vld [vmem:[#allocation7 + $0x84] ss:$8 sps:$4 sm:$0xff]  }
 0x129   :  { %2159 = vmatpush2.bf16.msra.mxu1 %v3514_v15  ;;  %2595 = vmatprep.subr.bf16.mxu0 %v3519_v16  ;;  %v530_v15 = vrot.slane %v3839_v11, %v3831_v8  ;;  %v534_v16 = vrot.slane %v3839_v11, %v3834_v9 }
 0x12a   :  { %2638 = vmatprep.subr.bf16.mxu1 %v3567_v19 }
 0x12b   :  { %2118 = vmatmul.mubr.bf16.vlgmr.msra.gmra.mxu0 %v3816_v6  ;;  %v3568_v6 = vld [vmem:[#allocation7 + $0x160] ss:$8 sps:$4 sm:$0xff]   ;;  %v1861_v2 = vpop.f32.mrf.mxu0 }
 0x12c   :  { %2161 = vmatmul.mubr.bf16.vlgmr.msra.gmra.mxu1 %v3818_v7  ;;  %2596 = vmatpush1.bf16.msra.mxu0 %v3517_v17  ;;  %v3529_v7 = vld [vmem:[#allocation7 + $0x30] ss:$8 sps:$4 sm:$0xff]   ;;  %v1904_v3 = vpop.f32.mrf.mxu1  ;;  %v3562_v17 = vld [vmem:[#allocation7 + $0x80] ss:$8 sps:$4 sm:$0xff]  }
 0x12d   :  { %2597 = vmatprep.subr.bf16.mxu0 %v3522_v18  ;;  %2639 = vmatpush1.bf16.msra.mxu1 %v3565_v26  ;;  %v1863_v12 = vpop.f32.mrf.mxu0 }
 0x12e   :  { %2640 = vmatprep.subr.bf16.mxu1 %v3570_v36  ;;  %v1906_v13 = vpop.f32.mrf.mxu1  ;;  %v3603_v36 = vld [vmem:[#allocation7 + $0x1b4] ss:$8 sps:$4 sm:$0xff]  }
 0x12f   :  { %v1865_v18 = vpop.f32.mrf.mxu0 }
 0x130   :  { %2598 = vmatpush1.bf16.msra.mxu0 %v3520_v20  ;;  %v1908_v20 = vpop.f32.mrf.mxu1  ;;  %v1866_v26 = vadd.f32 %v1865_v18, %v530_v15 }
 0x131   :  { %2599 = vmatprep.subr.bf16.mxu0 %v3525_v21  ;;  %2641 = vmatpush1.bf16.msra.mxu1 %v3568_v6  ;;  %v1862_v21 = vadd.f32 %v1861_v2, %v530_v15  ;;  %v541_v2 = vsub.s32 3, %v3745_v49 }
 0x132   :  { %2642 = vmatprep.subr.bf16.mxu1 %v3573_v22  ;;  %v3601_v22 = vld [vmem:[#allocation7 + $0x1b0] ss:$8 sps:$4 sm:$0xff]  }
 0x133   :  { %v1905_v6 = vadd.f32 %v1904_v3, %v1862_v21 }
 0x134   :  { %2600 = vmatpush1.bf16.msra.mxu0 %v3523_v23  ;;  %v1864_v23 = vadd.f32 %v1863_v12, %v534_v16 }
 0x135   :  { %2601 = vmatprep.subr.bf16.mxu0 %v3528_v24  ;;  %2643 = vmatpush1.bf16.msra.mxu1 %v3571_v28  ;;  %v1867_v24 = vpop.f32.mrf.mxu0 }
 0x136   :  { %2644 = vmatprep.subr.bf16.mxu1 %v3576_v30  ;;  %v1909_v30 = vadd.f32 %v1908_v20, %v1866_v26 }
 0x138   :  { %2602 = vmatpush1.bf16.msra.mxu0 %v3526_v25  ;;  %v1910_v25 = vpop.f32.mrf.mxu1 }
 0x139   :  { %2603 = vmatprep.subr.bf16.mxu0 %v3531_v35  ;;  %2645 = vmatpush1.bf16.msra.mxu1 %v3574_v37 }
 0x13a   :  { %2646 = vmatprep.subr.bf16.mxu1 %v3579_v32  ;;  %v3606_v32 = vld [vmem:[#allocation7 + $0x1a4] ss:$8 sps:$4 sm:$0xff]  }
 0x13c   :  { %2604 = vmatpush1.bf16.msra.mxu0 %v3529_v7  ;;  %v1907_v7 = vadd.f32 %v1906_v13, %v1864_v23 }
 0x13d   :  { %2605 = vmatprep.subr.bf16.mxu0 %v3534_v27  ;;  %2647 = vmatpush1.bf16.msra.mxu1 %v3577_v34  ;;  %v1868_v27 = vadd.f32 %v1867_v24, %v534_v16 }
 0x13e   :  { %2648 = vmatprep.subr.bf16.mxu1 %v3582_v39 }
 0x13f   :  { %v1911_v39 = vadd.f32 %v1910_v25, %v1868_v27 }
 0x140   :  { %2606 = vmatpush1.bf16.msra.mxu0 %v3532_v29 }
 0x141   :  { %2607 = vmatprep.subr.bf16.mxu0 %v3537_v31  ;;  %2649 = vmatpush1.bf16.msra.mxu1 %v3580_v41 }
 0x142   :  { %2650 = vmatprep.subr.bf16.mxu1 %v3585_v43 }
 0x144   :  { %2608 = vmatpush1.bf16.msra.mxu0 %v3535_v56 }
 0x145   :  { %2609 = vmatprep.subr.bf16.mxu0 %v3540_v33  ;;  %2651 = vmatpush1.bf16.msra.mxu1 %v3583_v45  ;;  %v3609_v45 = vld [vmem:[#allocation7 + $0x194] ss:$8 sps:$4 sm:$0xff]  }
 0x146   :  { %2652 = vmatprep.subr.bf16.mxu1 %v3588_v47 }
 0x148   :  { %2610 = vmatpush1.bf16.msra.mxu0 %v3538_v38  ;;  %v3604_v38 = vld [vmem:[#allocation7 + $0x1a0] ss:$8 sps:$4 sm:$0xff]  }
 0x149   :  { %2611 = vmatprep.subr.bf16.mxu0 %v3543_v40  ;;  %2653 = vmatpush1.bf16.msra.mxu1 %v3586_v50 }
 0x14a   :  { %2654 = vmatprep.subr.bf16.mxu1 %v3591_v52 }
 0x14c   :  { %2612 = vmatpush2.bf16.msra.mxu0 %v3541_v42 }
 0x14d   :  { %2613 = vmatprep.subr.bf16.mxu0 %v3546_v44  ;;  %2655 = vmatpush2.bf16.msra.mxu1 %v3589_v54  ;;  %v3610_v54 = vld [vmem:[#allocation7 + $0x180] ss:$8 sps:$4 sm:$0xff]  }
 0x14e   :  { %2656 = vmatprep.subr.bf16.mxu1 %v3594_v57  ;;  %v3612_v57 = vld [vmem:[#allocation7 + $0x184] ss:$8 sps:$4 sm:$0xff]  }
 0x150   :  { %2614 = vmatpush2.bf16.msra.mxu0 %v3544_v46 }
 0x151   :  { %2615 = vmatprep.subr.bf16.mxu0 %v3549_v48  ;;  %2657 = vmatpush2.bf16.msra.mxu1 %v3592_v59  ;;  %v3607_v48 = vld [vmem:[#allocation7 + $0x190] ss:$8 sps:$4 sm:$0xff]  }
 0x152   :  { %2658 = vmatprep.subr.bf16.mxu1 %v3597_v61 }
 0x154   :  { %2616 = vmatpush2.bf16.msra.mxu0 %v3547_v51 }
 0x155   :  { %2617 = vmatprep.subr.bf16.mxu0 %v3552_v53  ;;  %2659 = vmatpush2.bf16.msra.mxu1 %v3595_v63 }
 0x156   :  { %2660 = vmatprep.subr.bf16.mxu1 %v3600_v1  ;;  %v537_v1 = vsub.s32 2, %v3745_v49 }
 0x158   :  { %2618 = vmatpush2.bf16.msra.mxu0 %v3550_v55 }
 0x159   :  { %2619 = vmatprep.subr.bf16.mxu0 %v3555_v58  ;;  %2661 = vmatpush2.bf16.msra.mxu1 %v3598_v5  ;;  %v538_v5 = vrot.slane %v3839_v11, %v537_v1 }
 0x15a   :  { %2662 = vmatprep.subr.bf16.mxu1 %v3603_v36 }
 0x15c   :  { %2620 = vmatpush2.bf16.msra.mxu0 %v3553_v60 }
 0x15d   :  { %2621 = vmatprep.subr.bf16.mxu0 %v3558_v62  ;;  %2663 = vmatpush2.bf16.msra.mxu1 %v3601_v22 }
 0x15e   :  { %2664 = vmatprep.subr.bf16.mxu1 %v3606_v32 }
 0x160   :  { %2622 = vmatpush2.bf16.msra.mxu0 %v3556_v0 }
 0x161   :  { %2623 = vmatprep.subr.bf16.mxu0 %v3561_v4  ;;  %2665 = vmatpush2.bf16.msra.mxu1 %v3604_v38 }
 0x162   :  { %2666 = vmatprep.subr.bf16.mxu1 %v3609_v45 }
 0x164   :  { %2624 = vmatpush2.bf16.msra.mxu0 %v3559_v10  ;;  %v542_v10 = vrot.slane %v3839_v11, %v541_v2 }
 0x165   :  { %2625 = vmatprep.subr.bf16.mxu0 %v3564_v14  ;;  %2667 = vmatpush2.bf16.msra.mxu1 %v3607_v48 }
 0x166   :  { %2668 = vmatprep.subr.bf16.mxu1 %v3612_v57 }
 0x168   :  { %2626 = vmatpush2.bf16.msra.mxu0 %v3562_v17 }
 0x169   :  { %2669 = vmatpush2.bf16.msra.mxu1 %v3610_v54 }
 0x16b   :  { %v1947_v19 = vpop.f32.mrf.mxu0 }
 0x16c   :  { %v1990_v35 = vpop.f32.mrf.mxu1  ;;  %v1948_v31 = vadd.f32 %v1947_v19, %v1905_v6 }
 0x16d   :  { %v1949_v28 = vpop.f32.mrf.mxu0 }
 0x16e   :  { %v1992_v29 = vpop.f32.mrf.mxu1  ;;  %v1950_v37 = vadd.f32 %v1949_v28, %v1907_v7  ;;  %v1991_v42 = vadd.f32 %v1990_v35, %v1948_v31 }
 0x16f   :  { %v1951_v56 = vpop.f32.mrf.mxu0 }
 0x170   :  { %v1952_v33 = vadd.f32 %v1951_v56, %v1909_v30  ;;  %v1994_v34 = vpop.f32.mrf.mxu1  ;;  %v1993_v40 = vadd.f32 %v1992_v29, %v1950_v37  ;;  %v2179_v52 = vmul.f32 0.2, %v1991_v42  ;;  %vm2171_vm2 = vcmp.gt.f32.partialorder %v1991_v42, 0.0 }
 0x171   :  { %v1953_v41 = vpop.f32.mrf.mxu0 }
 0x172   :  { %v1995_v43 = vadd.f32 %v1994_v34, %v1952_v33  ;;  %v1954_v44 = vadd.f32 %v1953_v41, %v1911_v39  ;;  %v1996_v47 = vpop.f32.mrf.mxu1  ;;  %v2180_v50 = vmul.f32 0.2, %v1993_v40  ;;  %vm2172_vm1 = vcmp.gt.f32.partialorder %v1993_v40, 0.0 }
 0x173   :  { %v2187_v60 = vsel %vm2171_vm2, %v1991_v42, %v2179_v52 }
 0x174   :  { %v2183_v46 = vmul.f32 0.2, %v1995_v43  ;;  %vm2175_vm0 = vcmp.gt.f32.partialorder %v1995_v43, 0.0  ;;  %v1997_v51 = vadd.f32 %v1996_v47, %v1954_v44  ;;  %v2188_v58 = vsel %vm2172_vm1, %v1993_v40, %v2180_v50 }
 0x176   :  { %vm2176_vm3 = vcmp.gt.f32.partialorder %v1997_v51, 0.0  ;;  %v2184_v53 = vmul.f32 0.2, %v1997_v51  ;;  %v2191_v55 = vsel %vm2175_vm0, %v1995_v43, %v2183_v46  ;;  %v2263_v46 = vld [vmem:[%s3866_s4] sm:$0x3] }
 0x177   :  { %v2195_v62 = vpack.c.bf16 %v2191_v55, %v2187_v60  ;;  %v2268_v48 = vrot.slane %v2263_v46, %v3831_v8  ;;  %v2272_v50 = vrot.slane %v2263_v46, %v3834_v9 }
 0x178   :  { %v2192_v59 = vsel %vm2176_vm3, %v1997_v51, %v2184_v53 }
 0x179   :  { %v2196_v61 = vpack.c.bf16 %v2192_v59, %v2188_v58  ;;  %v2693_v58 = vld [vmem:[%s3867_s5] sm:$0x3] }
 0x17a   :  { %v2698_v1 = vrot.slane %v2693_v58, %v3831_v8  ;;  %v2702_v2 = vrot.slane %v2693_v58, %v3834_v9 }
 0x17b   :  { %2627 = vmatprep.mubr.bf16.mxu0 %v2196_v61 }
 0x17c   :  { %2628 = vmatmul.mubr.bf16.vlgmr.msra.gmra.mxu0 %v2195_v62 }
 0x1ab   :  { %v2033_v63 = vpop.f32.mrf.mxu0 }
 0x1ac   :  { %v2076_v0 = vpop.f32.mrf.mxu1  ;;  %v2034_v14 = vadd.f32 %v2033_v63, %v538_v5 }
 0x1ad   :  { %v2035_v3 = vpop.f32.mrf.mxu0 }
 0x1ae   :  { %v2078_v4 = vpop.f32.mrf.mxu1  ;;  %v2036_v15 = vadd.f32 %v2035_v3, %v542_v10  ;;  %v2077_v23 = vadd.f32 %v2076_v0, %v2034_v14 }
 0x1af   :  { %v2037_v12 = vpop.f32.mrf.mxu0 }
 0x1b0   :  { %v2080_v13 = vpop.f32.mrf.mxu1  ;;  %v2038_v18 = vadd.f32 %v2037_v12, %v538_v5  ;;  %v2079_v24 = vadd.f32 %v2078_v4, %v2036_v15 }
 0x1b1   :  { %v2039_v16 = vpop.f32.mrf.mxu0 }
 0x1b2   :  { %v2082_v17 = vpop.f32.mrf.mxu1  ;;  %v2040_v25 = vadd.f32 %v2039_v16, %v542_v10  ;;  %v2081_v19 = vadd.f32 %v2080_v13, %v2038_v18 }
 0x1b4   :  { %v2083_v22 = vadd.f32 %v2082_v17, %v2040_v25 }
 0x1eb   :  { %v2119_v20 = vpop.f32.mrf.mxu0 }
 0x1ec   :  { %v2162_v21 = vpop.f32.mrf.mxu1  ;;  %v2120_v35 = vadd.f32 %v2119_v20, %v2077_v23 }
 0x1ed   :  { %v2121_v26 = vpop.f32.mrf.mxu0 }
 0x1ee   :  { %v2164_v49 = vpop.f32.mrf.mxu1  ;;  %v2122_v36 = vadd.f32 %v2121_v26, %v2079_v24  ;;  %v2163_v29 = vadd.f32 %v2162_v21, %v2120_v35  ;;  %v3100_v24 = vld [vmem:[#allocation2] ss:$0 sm:$0xff] }
 0x1ef   :  { %v2123_v6 = vpop.f32.mrf.mxu0 }
 0x1f0   :  { %v2124_v7 = vadd.f32 %v2123_v6, %v2081_v19  ;;  %v2166_v11 = vpop.f32.mrf.mxu1  ;;  %v2165_v27 = vadd.f32 %v2164_v49, %v2122_v36  ;;  %v2181_v34 = vmul.f32 0.2, %v2163_v29  ;;  %vm2173_vm6 = vcmp.gt.f32.partialorder %v2163_v29, 0.0 }
 0x1f1   :  { %v2125_v28 = vpop.f32.mrf.mxu0 }
 0x1f2   :  { %v2167_v30 = vadd.f32 %v2166_v11, %v2124_v7  ;;  %v2126_v31 = vadd.f32 %v2125_v28, %v2083_v22  ;;  %v2168_v56 = vpop.f32.mrf.mxu1  ;;  %v2182_v32 = vmul.f32 0.2, %v2165_v27  ;;  %vm2174_vm5 = vcmp.gt.f32.partialorder %v2165_v27, 0.0 }
 0x1f3   :  { %v2189_v42 = vsel %vm2173_vm6, %v2163_v29, %v2181_v34 }
 0x1f4   :  { %v2185_v37 = vmul.f32 0.2, %v2167_v30  ;;  %vm2177_vm4 = vcmp.gt.f32.partialorder %v2167_v30, 0.0  ;;  %v2169_v33 = vadd.f32 %v2168_v56, %v2126_v31  ;;  %v2190_v40 = vsel %vm2174_vm5, %v2165_v27, %v2182_v32 }
 0x1f6   :  { %vm2178_vm7 = vcmp.gt.f32.partialorder %v2169_v33, 0.0  ;;  %v2186_v38 = vmul.f32 0.2, %v2169_v33  ;;  %v2193_v39 = vsel %vm2177_vm4, %v2167_v30, %v2185_v37 }
 0x1f7   :  { %v2197_v44 = vpack.c.bf16 %v2193_v39, %v2189_v42 }
 0x1f8   :  { %v2194_v41 = vsel %vm2178_vm7, %v2169_v33, %v2186_v38 }
 0x1f9   :  { %v2198_v43 = vpack.c.bf16 %v2194_v41, %v2190_v40 }
 0x1fb   :  { %2670 = vmatprep.mubr.bf16.mxu1 %v2198_v43 }
 0x1fc   :  { %2671 = vmatmul.mubr.bf16.vlgmr.msra.gmra.mxu1 %v2197_v44 }
 0x23c   :  { %v2629_v45 = vpop.f32.mrf.mxu0 }
 0x23d   :  { %v2630_v52 = vadd.f32 %v2629_v45, %v2268_v48 }
 0x23e   :  { %v2631_v47 = vpop.f32.mrf.mxu0 }
 0x23f   :  { %v2632_v54 = vadd.f32 %v2631_v47, %v2272_v50 }
 0x240   :  { %v2633_v51 = vpop.f32.mrf.mxu0 }
 0x241   :  { %v2634_v60 = vadd.f32 %v2633_v51, %v2268_v48 }
 0x242   :  { %v2635_v55 = vpop.f32.mrf.mxu0 }
 0x243   :  { %v2636_v63 = vadd.f32 %v2635_v55, %v2272_v50 }
 0x2bc   :  { %v2672_v53 = vpop.f32.mrf.mxu1 }
 0x2bd   :  { %v2673_v57 = vadd.f32 %v2672_v53, %v2630_v52 }
 0x2be   :  { %v2674_v59 = vpop.f32.mrf.mxu1 }
 0x2bf   :  { %vm2681_vm8 = vcmp.gt.f32.partialorder %v2673_v57, 0.0  ;;  %v2685_v61 = vmul.f32 0.2, %v2673_v57  ;;  %v2675_v62 = vadd.f32 %v2674_v59, %v2632_v54 }
 0x2c0   :  { %v2676_v0 = vpop.f32.mrf.mxu1 }
 0x2c1   :  { %vm2682_vm9 = vcmp.gt.f32.partialorder %v2675_v62, 0.0  ;;  %v2686_v3 = vmul.f32 0.2, %v2675_v62  ;;  %v2677_v4 = vadd.f32 %v2676_v0, %v2634_v60  ;;  %v2689_v5 = vsel %vm2681_vm8, %v2673_v57, %v2685_v61 }
 0x2c2   :  { %v2678_v10 = vpop.f32.mrf.mxu1  ;;  %v2705_v15 = vmul.f32 %v2698_v1, %v2689_v5 }
 0x2c3   :  { %vm2683_vm10 = vcmp.gt.f32.partialorder %v2677_v4, 0.0  ;;  %v2687_v12 = vmul.f32 0.2, %v2677_v4  ;;  %v2679_v13 = vadd.f32 %v2678_v10, %v2636_v63  ;;  %v2690_v14 = vsel %vm2682_vm9, %v2675_v62, %v2686_v3 }
 0x2c4   :  { %v2706_v16 = vmul.f32 %v2702_v2, %v2690_v14 }
 0x2c5   :  { %vm2684_vm11 = vcmp.gt.f32.partialorder %v2679_v13, 0.0  ;;  %v2688_v17 = vmul.f32 0.2, %v2679_v13  ;;  %v2691_v18 = vsel %vm2683_vm10, %v2677_v4, %v2687_v12 }
 0x2c6   :  { %v2709_v20 = vadd.f32 %v2706_v16, %v2705_v15  ;;  %v2707_v8 = vmul.f32 %v2698_v1, %v2691_v18 }
 0x2c7   :  { %v2692_v21 = vsel %vm2684_vm11, %v2679_v13, %v2688_v17 }
 0x2c8   :  { %2710 = vadd.xlane.f32.xlu0 %v2709_v20  ;;  %v2708_v23 = vmul.f32 %v2702_v2, %v2692_v21 }
 0x2ca   :  { %v2712_v9 = vadd.f32 %v2708_v23, %v2707_v8 }
 0x2cc   :  { %2713 = vadd.xlane.f32.xlu0 %v2712_v9 }
 0x351   :  { %v2711_v25 = vpop.xlane.xlu0 %2710 }
 0x352   :  { %v2722_v26 = vadd.f32 %v3100_v24, %v2711_v25 }
 0x354   :  { %v2724_v49 = vsub.f32 0.0, %v2722_v26 }
 0x355   :  { %v2714_v19 = vpop.xlane.xlu0 %2713 }
 0x356   :  { %v2726_v35 = vmul.f32 1.442695, %v2724_v49  ;;  %v2723_v36 = vadd.f32 %v3100_v24, %v2714_v19 }
 0x358   :  { %3613 = vpow2.f32 %v2726_v35  ;;  %v2725_v6 = vsub.f32 0.0, %v2723_v36 }
 0x35a   :  { %v2728_v7 = vmul.f32 1.442695, %v2725_v6 }
 0x35c   :  { %3615 = vpow2.f32 %v2728_v7 }
 0x365   :  { %v3614_v11 = vpop.eup %3613 }
 0x366   :  { %v2730_v22 = vadd.f32 1.0, %v3614_v11 }
 0x368   :  { %3617 = vrcp.f32 %v2730_v22 }
 0x369   :  { %v3616_v27 = vpop.eup %3615 }
 0x36a   :  { %v2731_v28 = vadd.f32 1.0, %v3616_v27 }
 0x36c   :  { %3619 = vrcp.f32 %v2731_v28 }
 0x375   :  { %v3618_v29 = vpop.eup %3617 }
 0x376   :  { %2735 = vst.msk [vmem:[#allocation8] sm:$0xff] %vm2734_vm12, %v3618_v29 }
 0x379   :  { %v3620_v30 = vpop.eup %3619 }
 0x37d   :  { %v2755_v31 = vld [vmem:[#allocation8] sm:$0x3] }
 0x37e   :  { %2756 = vst [vmem:[%s3869_s7] sm:$0x3] %v2755_v31 }
 0x37f   :  { %2774 = vsyncpa [#allocation4], 1 }
 0x380   :  { %2775 = vsyncpa [#allocation6], 1 }

</bundles_post_ra>
